<compile_context>
chip_gen: v7x
topology: tpu7x:2x2x1
jax: 0.10.0
libtpu: 0.0.40
codegen_flags: <defaults>
</compile_context>

<pallas_src>
import functools

import jax
import jax.numpy as jnp
from jax.experimental import pallas as pl
from jax.experimental.pallas import tpu as pltpu

_CPAD = 128        # channel padding (all channel dims here <= 128)
_NODE_BLOCK = 128  # per-graph node padding (one MXU-sized block per graph)


def _derived_vmem_limit():
    """~7/8 of this generation's physical VMEM (128 MiB v5e/v6e, 64 MiB v7x)."""
    try:
        cap = int(pltpu.get_tpu_info().vmem_capacity_bytes)
    except Exception:
        cap = 64 * 1024 * 1024
    return cap * 7 // 8


# ----------------------------------------------------------------------------
# Fused per-graph Pallas kernel:
#   5 x (A_g @ (H @ W_l) + epilogue) -> masked add-pool -> relu -> fc1 -> relu
#   -> fc2, one graph per grid step.
# ----------------------------------------------------------------------------
def _gcn_per_graph_kernel(a_ref, x_ref, m_ref, w_ref, b_ref, s_ref, t_ref,
                          fc1w_ref, fc1b_ref, fc2w_ref, fc2b_ref, o_ref):
    a = a_ref[0]          # (NB, NB)  bf16, row = target node, col = source node
    h = x_ref[0]          # (NB, Cp)  bf16

    # NOTE on padded node rows: they are zero after every A matmul (A's padded
    # rows/cols are zero) but pick up bias/shift values in the epilogues.  They
    # are neutralized because (a) A's padded columns are zero for the next
    # layer and (b) the pooling mask row m_ref excludes them.  Do not change
    # the pooling below to a plain row-sum.
    for l in range(5):
        # bf16 MXU operands, f32 accumulation.  All padded channel dims are
        # equal (Cp), so A @ (H @ W) vs (A @ H) @ W cost the same here.
        hw = jnp.dot(h, w_ref[l], preferred_element_type=jnp.float32)
        z = jnp.dot(a, hw.astype(jnp.bfloat16),
                    preferred_element_type=jnp.float32)

        scale = s_ref[l:l + 1, :]   # (1, Cp) f32
        shift = t_ref[l:l + 1, :]   # (1, Cp) f32
        if l < 3:
            # conv -> relu -> bn   (layers 1-3)
            z = jnp.maximum(z + b_ref[l:l + 1, :], 0.0) * scale + shift
        elif l == 3:
            # conv -> bn -> relu   (layer 4; conv bias folded into shift)
            z = jnp.maximum(z * scale + shift, 0.0)
        else:
            # conv -> bn           (layer 5; conv bias folded into shift)
            z = z * scale + shift
        h = z.astype(jnp.bfloat16)

    # Masked global_add_pool for this graph as a (1, NB) @ (NB, Cp) matmul,
    # then relu (matches the reference: pool -> relu).
    pooled = jnp.dot(m_ref[0], h, preferred_element_type=jnp.float32)  # (1, Cp)
    pooled = jnp.maximum(pooled, 0.0)

    # fc1 -> relu -> (dropout p=0.25 is identity in eval mode) -> fc2
    g1 = jnp.dot(pooled.astype(jnp.bfloat16), fc1w_ref[...],
                 preferred_element_type=jnp.float32)
    g1 = jnp.maximum(g1 + fc1b_ref[...], 0.0)
    out = jnp.dot(g1.astype(jnp.bfloat16), fc2w_ref[...],
                  preferred_element_type=jnp.float32)
    o_ref[0] = out + fc2b_ref[...]   # (1, Cp) lane-dense; col 0 is the score


def fused_gcn_pallas(a_blocks, x_blocks, mask, packed):
    g, nb, _ = a_blocks.shape
    cpad = packed["w"].shape[2]
    # Whole-array, single-buffered VMEM residency for everything that does not
    # change across grid steps (weights, biases, BN scale/shift, fc params).
    resident = pl.BlockSpec(memory_space=pltpu.MemorySpace.VMEM)
    return pl.pallas_call(
        _gcn_per_graph_kernel,
        out_shape=jax.ShapeDtypeStruct((g, 1, cpad), jnp.float32),
        grid=(g,),
        in_specs=[
            pl.BlockSpec((1, nb, nb), lambda i: (i, 0, 0)),     # A_g block
            pl.BlockSpec((1, nb, cpad), lambda i: (i, 0, 0)),   # X_g block
            pl.BlockSpec((1, 1, nb), lambda i: (i, 0, 0)),      # pooling mask row
            resident, resident, resident, resident,             # w, bias, scale, shift
            resident, resident, resident, resident,             # fc1w, fc1b, fc2w, fc2b
        ],
        out_specs=pl.BlockSpec((1, 1, cpad), lambda i: (i, 0, 0)),
        compiler_params=pltpu.CompilerParams(
            dimension_semantics=("parallel",),        # megacore shards graphs (v7x)
            vmem_limit_bytes=_derived_vmem_limit()),
    )(a_blocks, x_blocks, mask,
      packed["w"], packed["bias"], packed["scale"], packed["shift"],
      packed["fc1_w"], packed["fc1_b"], packed["fc2_w"], packed["fc2_b"])


# ----------------------------------------------------------------------------
# Parameter init / packing (eval-mode BN folded to scale/shift)
# ----------------------------------------------------------------------------
def glorot(key, fan_in, fan_out):
    limit = jnp.sqrt(6.0 / (fan_in + fan_out))
    return jax.random.uniform(key, (fan_in, fan_out), jnp.float32, -limit, limit)


def init_params(key, num_features, hidden_dim):
    dims = [
        (num_features, hidden_dim),
        (hidden_dim, hidden_dim * 2),
        (hidden_dim * 2, hidden_dim * 4),
        (hidden_dim * 4, hidden_dim * 4),
        (hidden_dim * 4, hidden_dim * 8),
    ]
    params = {}
    for i, (fi, fo) in enumerate(dims, start=1):
        key, k1, k2, k3, k4, k5 = jax.random.split(key, 6)
        params[f"conv{i}_w"] = glorot(k1, fi, fo)
        params[f"conv{i}_b"] = jnp.zeros((fo,), jnp.float32)
        # BatchNorm1d(fo) eval-mode stats / affine (deterministic, non-trivial)
        gamma = 1.0 + 0.1 * jax.random.normal(k2, (fo,), jnp.float32)
        beta = 0.1 * jax.random.normal(k3, (fo,), jnp.float32)
        rmean = 0.05 * jax.random.normal(k4, (fo,), jnp.float32)
        rvar = 1.0 + 0.1 * jax.random.uniform(k5, (fo,), jnp.float32)
        scale = gamma / jnp.sqrt(rvar + 1e-5)
        params[f"bn{i}_scale"] = scale
        params[f"bn{i}_shift"] = beta - rmean * scale
    key, k1, k2 = jax.random.split(key, 3)
    params["fc1_w"] = glorot(k1, hidden_dim * 8, hidden_dim * 4)
    params["fc1_b"] = jnp.zeros((hidden_dim * 4,), jnp.float32)
    params["fc2_w"] = glorot(k2, hidden_dim * 4, 1)
    params["fc2_b"] = jnp.zeros((1,), jnp.float32)
    return params, dims


def pack_params(params, dims, hidden_dim, cpad=_CPAD):
    """Zero-pad / stack params for the fused kernel (bf16 matmul weights,
    f32 affine vectors; conv bias folded into BN shift for layers 4-5)."""
    assert all(fi <= cpad and fo <= cpad for fi, fo in dims), \
        "channel padding assumes all channel dims <= _CPAD (raise _CPAD otherwise)"
    w = jnp.zeros((5, cpad, cpad), jnp.float32)
    bias = jnp.zeros((5, cpad), jnp.float32)
    scale = jnp.zeros((5, cpad), jnp.float32)
    shift = jnp.zeros((5, cpad), jnp.float32)
    for i, (fi, fo) in enumerate(dims, start=1):
        w = w.at[i - 1, :fi, :fo].set(params[f"conv{i}_w"])
        s = params[f"bn{i}_scale"]
        t = params[f"bn{i}_shift"]
        b = params[f"conv{i}_b"]
        scale = scale.at[i - 1, :fo].set(s)
        if i <= 3:                       # relu sits between conv bias and BN
            bias = bias.at[i - 1, :fo].set(b)
            shift = shift.at[i - 1, :fo].set(t)
        else:                            # BN directly after conv: fold bias
            shift = shift.at[i - 1, :fo].set(b * s + t)
    h8, h4 = hidden_dim * 8, hidden_dim * 4
    fc1w = jnp.zeros((cpad, cpad), jnp.float32).at[:h8, :h4].set(params["fc1_w"])
    fc1b = jnp.zeros((1, cpad), jnp.float32).at[0, :h4].set(params["fc1_b"])
    fc2w = jnp.zeros((cpad, cpad), jnp.float32).at[:h4, 0].set(params["fc2_w"][:, 0])
    fc2b = jnp.zeros((1, cpad), jnp.float32).at[0, 0].set(params["fc2_b"][0])
    return dict(w=w.astype(jnp.bfloat16), bias=bias, scale=scale, shift=shift,
                fc1_w=fc1w.astype(jnp.bfloat16), fc1_b=fc1b,
                fc2_w=fc2w.astype(jnp.bfloat16), fc2_b=fc2b)


# ----------------------------------------------------------------------------
# Forward pass (mirrors GCN.forward, eval mode) — single jitted program,
# single Pallas launch over a per-graph grid.
# ----------------------------------------------------------------------------
@functools.partial(jax.jit, static_argnames=("num_graphs", "node_block"))
def gcn_forward(packed, x, edge_index, edge_weight, batch, physics_score, *,
                num_graphs, node_block=_NODE_BLOCK):
    del physics_score  # accepted but unused, exactly as in the reference forward
    n, f = x.shape
    cpad = packed["w"].shape[2]
    g, nb = num_graphs, node_block

    # Per-graph node layout (assumes PyG-style batching: nodes of each graph
    # are contiguous, `batch` is sorted, and every graph has <= node_block
    # nodes — see TODO(synk) at the top for larger graphs).
    counts = jnp.zeros((g,), jnp.int32).at[batch].add(1)
    offsets = jnp.concatenate(
        [jnp.zeros((1,), jnp.int32), jnp.cumsum(counts)[:-1]])
    local = jnp.arange(n, dtype=jnp.int32) - offsets[batch]

    # Node features scattered into per-graph (nb, cpad) blocks; bf16 only at
    # the kernel boundary.
    x_pad = jnp.pad(x.astype(jnp.float32), ((0, 0), (0, cpad - f)))
    x_blocks = jnp.zeros((g, nb, cpad), jnp.float32).at[batch, local].set(x_pad)
    x_blocks = x_blocks.astype(jnp.bfloat16)

    # Per-graph normalized adjacency D^-1/2 (A + I) D^-1/2 (row = target,
    # col = source).  The dense block-diagonal Np x Np matrix is never built.
    src, dst = edge_index[0], edge_index[1]
    a_blocks = jnp.zeros((g, nb, nb), jnp.float32)
    a_blocks = a_blocks.at[batch[dst], local[dst], local[src]].add(
        edge_weight.astype(jnp.float32))
    a_blocks = a_blocks.at[batch, local, local].add(1.0)   # self loops (1.0)
    deg = jnp.sum(a_blocks, axis=2)
    dinv = jnp.where(deg > 0, jax.lax.rsqrt(deg), 0.0)     # padded rows stay 0
    a_blocks = (dinv[:, :, None] * a_blocks * dinv[:, None, :]).astype(jnp.bfloat16)

    # Pooling mask row per graph: excludes zero-padded node rows (which pick up
    # bias/shift values inside the kernel's epilogues).
    mask = (jnp.arange(nb, dtype=jnp.int32)[None, :] < counts[:, None])
    mask = mask.astype(jnp.bfloat16).reshape(g, 1, nb)

    out = fused_gcn_pallas(a_blocks, x_blocks, mask, packed)
    return out[:, 0, 0]   # .view(-1)


# ----------------------------------------------------------------------------
# Pure-JAX f32 reference (dense batched graph) for a numerical sanity check
# ----------------------------------------------------------------------------
def build_normalized_adjacency(edge_index, edge_weight, num_nodes):
    src, dst = edge_index[0], edge_index[1]
    a = jnp.zeros((num_nodes, num_nodes), jnp.float32)
    a = a.at[dst, src].add(edge_weight.astype(jnp.float32))
    a = a + jnp.eye(num_nodes, dtype=jnp.float32)
    deg = jnp.sum(a, axis=1)
    dinv = jnp.where(deg > 0, 1.0 / jnp.sqrt(deg), 0.0)
    return dinv[:, None] * a * dinv[None, :]


def gcn_reference(params, x, edge_index, edge_weight, batch, num_graphs):
    a = build_normalized_adjacency(edge_index, edge_weight, x.shape[0])
    h = x
    modes = ("relu_bn", "relu_bn", "relu_bn", "bn_relu", "bn")
    for i, mode in enumerate(modes, start=1):
        z = a @ (h @ params[f"conv{i}_w"]) + params[f"conv{i}_b"]
        s, t = params[f"bn{i}_scale"], params[f"bn{i}_shift"]
        if mode == "relu_bn":
            z = jnp.maximum(z, 0.0) * s + t
        elif mode == "bn_relu":
            z = jnp.maximum(z * s + t, 0.0)
        else:
            z = z * s + t
        h = z
    pooled = jnp.zeros((num_graphs, h.shape[1]), jnp.float32).at[batch].add(h)
    pooled = jnp.maximum(pooled, 0.0)
    g = jnp.maximum(pooled @ params["fc1_w"] + params["fc1_b"], 0.0)
    return (g @ params["fc2_w"] + params["fc2_b"]).reshape(-1)


# ----------------------------------------------------------------------------
if __name__ == "__main__":
    key = jax.random.PRNGKey(0)

    NUM_FEATURES = 16
    HIDDEN_DIM = 16
    N_GRAPHS = 4
    NODES_PER_GRAPH = 16
    N_NODES = N_GRAPHS * NODES_PER_GRAPH
    N_EDGES = 128

    key, kx, ksrc, kdst, keg, kw, kphys, kparam = jax.random.split(key, 8)

    x = jax.random.normal(kx, (N_NODES, NUM_FEATURES), jnp.float32)

    # Edges are generated within graphs (as PyG batching guarantees: no
    # cross-graph edges), with no pre-existing self loops.
    src_l = jax.random.randint(ksrc, (N_EDGES,), 0, NODES_PER_GRAPH)
    dst_l = jax.random.randint(kdst, (N_EDGES,), 0, NODES_PER_GRAPH)
    dst_l = jnp.where(dst_l == src_l, (dst_l + 1) % NODES_PER_GRAPH, dst_l)
    egraph = jax.random.randint(keg, (N_EDGES,), 0, N_GRAPHS)
    src = src_l + egraph * NODES_PER_GRAPH
    dst = dst_l + egraph * NODES_PER_GRAPH
    edge_index = jnp.stack([src, dst], axis=0).astype(jnp.int32)
    edge_weight = jax.random.uniform(kw, (N_EDGES,), jnp.float32, 0.1, 1.0)

    batch = jnp.repeat(jnp.arange(N_GRAPHS, dtype=jnp.int32), NODES_PER_GRAPH)
    physics_score = jax.random.normal(kphys, (N_GRAPHS,), jnp.float32)  # unused

    assert NODES_PER_GRAPH <= _NODE_BLOCK  # per-graph single-block assumption

    params, dims = init_params(kparam, NUM_FEATURES, HIDDEN_DIM)
    packed = pack_params(params, dims, HIDDEN_DIM)

    out = gcn_forward(packed, x, edge_index, edge_weight, batch, physics_score,
                      num_graphs=N_GRAPHS)
    out = jax.block_until_ready(out)

    assert out.shape == (N_GRAPHS,), out.shape
    assert bool(jnp.all(jnp.isfinite(out)))

    # bf16-matmul / f32-accumulate vs f32 reference (tighter than before).
    ref = gcn_reference(params, x, edge_index, edge_weight, batch, N_GRAPHS)
    err = float(jnp.max(jnp.abs(out - ref)))
    tol = 0.05 * (1.0 + float(jnp.max(jnp.abs(ref))))
    assert err <= tol, (err, tol)

    print("KERNEL_OK")
</pallas_src>

<mosaic_0001>
module attributes {stable_mosaic.version = 11 : i64} {
  func.func private @main(%arg0: i32) attributes {dimension_semantics = [#tpu.dimension_semantics<core_parallel>], iteration_bounds = array<i64: 2>, tpu.core_type = #tpu.core_type<sc_scalar_subcore>, window_params = []} {
    return
  }
}

module attributes {stable_mosaic.version = 11 : i64} {
  func.func private @main(%arg0: i32) attributes {dimension_semantics = [#tpu.dimension_semantics<core_parallel>], iteration_bounds = array<i64: 2>, tpu.core_type = #tpu.core_type<sc_scalar_subcore>, window_params = []} {
    return
  }
}

module attributes {stable_mosaic.version = 11 : i64} {
  func.func @_gcn_per_graph_kernel(%arg0: i32, %arg1: memref<1x128x128xbf16, #tpu.memory_space<vmem>>, %arg2: memref<1x128x128xbf16, #tpu.memory_space<vmem>>, %arg3: memref<1x1x128xbf16, #tpu.memory_space<vmem>>, %arg4: memref<5x128x128xbf16, #tpu.memory_space<vmem>>, %arg5: memref<5x128xf32, #tpu.memory_space<vmem>>, %arg6: memref<5x128xf32, #tpu.memory_space<vmem>>, %arg7: memref<5x128xf32, #tpu.memory_space<vmem>>, %arg8: memref<128x128xbf16, #tpu.memory_space<vmem>>, %arg9: memref<1x128xf32, #tpu.memory_space<vmem>>, %arg10: memref<128x128xbf16, #tpu.memory_space<vmem>>, %arg11: memref<1x128xf32, #tpu.memory_space<vmem>>, %arg12: memref<1x1x128xf32, #tpu.memory_space<vmem>>) attributes {dimension_semantics = [#tpu.dimension_semantics<parallel>], iteration_bounds = array<i64: 4>, scalar_prefetch = 0 : i64, scratch_operands = 0 : i64, tpu.core_type = #tpu.core_type<tc>, window_params = [{transform_indices = @transform_0, window_bounds = array<i64: 1, 128, 128>}, {transform_indices = @transform_1, window_bounds = array<i64: 1, 128, 128>}, {transform_indices = @transform_2, window_bounds = array<i64: 1, 1, 128>}, {pipeline_mode = #tpu.pipeline_mode<synchronous>, transform_indices = @transform_3, window_bounds = array<i64: 5, 128, 128>}, {pipeline_mode = #tpu.pipeline_mode<synchronous>, transform_indices = @transform_4, window_bounds = array<i64: 5, 128>}, {pipeline_mode = #tpu.pipeline_mode<synchronous>, transform_indices = @transform_5, window_bounds = array<i64: 5, 128>}, {pipeline_mode = #tpu.pipeline_mode<synchronous>, transform_indices = @transform_6, window_bounds = array<i64: 5, 128>}, {pipeline_mode = #tpu.pipeline_mode<synchronous>, transform_indices = @transform_7, window_bounds = array<i64: 128, 128>}, {pipeline_mode = #tpu.pipeline_mode<synchronous>, transform_indices = @transform_8, window_bounds = array<i64: 1, 128>}, {pipeline_mode = #tpu.pipeline_mode<synchronous>, transform_indices = @transform_9, window_bounds = array<i64: 128, 128>}, {pipeline_mode = #tpu.pipeline_mode<synchronous>, transform_indices = @transform_10, window_bounds = array<i64: 1, 128>}, {transform_indices = @transform_11, window_bounds = array<i64: 1, 1, 128>}]} {
    %c0 = arith.constant 0 : index
    %c0_0 = arith.constant 0 : index
    %c0_1 = arith.constant 0 : index
    %0 = vector.load %arg1[%c0, %c0_0, %c0_1] : memref<1x128x128xbf16, #tpu.memory_space<vmem>>, vector<1x128x128xbf16>
    %1 = vector.shape_cast %0 : vector<1x128x128xbf16> to vector<128x128xbf16>
    %c0_2 = arith.constant 0 : index
    %c0_3 = arith.constant 0 : index
    %c0_4 = arith.constant 0 : index
    %2 = vector.load %arg2[%c0_2, %c0_3, %c0_4] : memref<1x128x128xbf16, #tpu.memory_space<vmem>>, vector<1x128x128xbf16>
    %3 = vector.shape_cast %2 : vector<1x128x128xbf16> to vector<128x128xbf16>
    %c0_5 = arith.constant 0 : index
    %c0_6 = arith.constant 0 : index
    %c0_7 = arith.constant 0 : index
    %4 = vector.load %arg4[%c0_5, %c0_6, %c0_7] : memref<5x128x128xbf16, #tpu.memory_space<vmem>>, vector<1x128x128xbf16>
    %5 = vector.shape_cast %4 : vector<1x128x128xbf16> to vector<128x128xbf16>
    %cst = arith.constant dense<0.000000e+00> : vector<128x128xf32>
    %6 = tpu.matmul %3, %5, %cst {dimension_numbers = #tpu.dot_dimension_numbers<[1], [0], [0], [1], [0, 0, 1, 1], [], []>} : vector<128x128xbf16>, vector<128x128xbf16>, vector<128x128xf32> -> vector<128x128xf32>
    %7 = arith.truncf %6 : vector<128x128xf32> to vector<128x128xbf16>
    %cst_8 = arith.constant dense<0.000000e+00> : vector<128x128xf32>
    %8 = tpu.matmul %1, %7, %cst_8 {dimension_numbers = #tpu.dot_dimension_numbers<[1], [0], [0], [1], [0, 0, 1, 1], [], []>} : vector<128x128xbf16>, vector<128x128xbf16>, vector<128x128xf32> -> vector<128x128xf32>
    %c0_9 = arith.constant 0 : index
    %c0_10 = arith.constant 0 : index
    %9 = vector.load %arg6[%c0_9, %c0_10] : memref<5x128xf32, #tpu.memory_space<vmem>>, vector<1x128xf32>
    %c0_11 = arith.constant 0 : index
    %c0_12 = arith.constant 0 : index
    %10 = vector.load %arg7[%c0_11, %c0_12] : memref<5x128xf32, #tpu.memory_space<vmem>>, vector<1x128xf32>
    %c0_13 = arith.constant 0 : index
    %c0_14 = arith.constant 0 : index
    %11 = vector.load %arg5[%c0_13, %c0_14] : memref<5x128xf32, #tpu.memory_space<vmem>>, vector<1x128xf32>
    %12 = vector.broadcast %11 : vector<1x128xf32> to vector<128x128xf32>
    %13 = arith.addf %8, %12 : vector<128x128xf32>
    %cst_15 = arith.constant 0.000000e+00 : f32
    %14 = vector.broadcast %cst_15 : f32 to vector<128x128xf32>
    %15 = arith.maximumf %13, %14 : vector<128x128xf32>
    %16 = vector.broadcast %9 : vector<1x128xf32> to vector<128x128xf32>
    %17 = arith.mulf %15, %16 : vector<128x128xf32>
    %18 = vector.broadcast %10 : vector<1x128xf32> to vector<128x128xf32>
    %19 = arith.addf %17, %18 : vector<128x128xf32>
    %20 = arith.truncf %19 : vector<128x128xf32> to vector<128x128xbf16>
    %c1 = arith.constant 1 : index
    %c0_16 = arith.constant 0 : index
    %c0_17 = arith.constant 0 : index
    %21 = vector.load %arg4[%c1, %c0_16, %c0_17] : memref<5x128x128xbf16, #tpu.memory_space<vmem>>, vector<1x128x128xbf16>
    %22 = vector.shape_cast %21 : vector<1x128x128xbf16> to vector<128x128xbf16>
    %cst_18 = arith.constant dense<0.000000e+00> : vector<128x128xf32>
    %23 = tpu.matmul %20, %22, %cst_18 {dimension_numbers = #tpu.dot_dimension_numbers<[1], [0], [0], [1], [0, 0, 1, 1], [], []>} : vector<128x128xbf16>, vector<128x128xbf16>, vector<128x128xf32> -> vector<128x128xf32>
    %24 = arith.truncf %23 : vector<128x128xf32> to vector<128x128xbf16>
    %cst_19 = arith.constant dense<0.000000e+00> : vector<128x128xf32>
    %25 = tpu.matmul %1, %24, %cst_19 {dimension_numbers = #tpu.dot_dimension_numbers<[1], [0], [0], [1], [0, 0, 1, 1], [], []>} : vector<128x128xbf16>, vector<128x128xbf16>, vector<128x128xf32> -> vector<128x128xf32>
    %c1_20 = arith.constant 1 : index
    %c0_21 = arith.constant 0 : index
    %26 = vector.load %arg6[%c1_20, %c0_21] : memref<5x128xf32, #tpu.memory_space<vmem>>, vector<1x128xf32>
    %c1_22 = arith.constant 1 : index
    %c0_23 = arith.constant 0 : index
    %27 = vector.load %arg7[%c1_22, %c0_23] : memref<5x128xf32, #tpu.memory_space<vmem>>, vector<1x128xf32>
    %c1_24 = arith.constant 1 : index
    %c0_25 = arith.constant 0 : index
    %28 = vector.load %arg5[%c1_24, %c0_25] : memref<5x128xf32, #tpu.memory_space<vmem>>, vector<1x128xf32>
    %29 = vector.broadcast %28 : vector<1x128xf32> to vector<128x128xf32>
    %30 = arith.addf %25, %29 : vector<128x128xf32>
    %cst_26 = arith.constant 0.000000e+00 : f32
    %31 = vector.broadcast %cst_26 : f32 to vector<128x128xf32>
    %32 = arith.maximumf %30, %31 : vector<128x128xf32>
    %33 = vector.broadcast %26 : vector<1x128xf32> to vector<128x128xf32>
    %34 = arith.mulf %32, %33 : vector<128x128xf32>
    %35 = vector.broadcast %27 : vector<1x128xf32> to vector<128x128xf32>
    %36 = arith.addf %34, %35 : vector<128x128xf32>
    %37 = arith.truncf %36 : vector<128x128xf32> to vector<128x128xbf16>
    %c2 = arith.constant 2 : index
    %c0_27 = arith.constant 0 : index
    %c0_28 = arith.constant 0 : index
    %38 = vector.load %arg4[%c2, %c0_27, %c0_28] : memref<5x128x128xbf16, #tpu.memory_space<vmem>>, vector<1x128x128xbf16>
    %39 = vector.shape_cast %38 : vector<1x128x128xbf16> to vector<128x128xbf16>
    %cst_29 = arith.constant dense<0.000000e+00> : vector<128x128xf32>
    %40 = tpu.matmul %37, %39, %cst_29 {dimension_numbers = #tpu.dot_dimension_numbers<[1], [0], [0], [1], [0, 0, 1, 1], [], []>} : vector<128x128xbf16>, vector<128x128xbf16>, vector<128x128xf32> -> vector<128x128xf32>
    %41 = arith.truncf %40 : vector<128x128xf32> to vector<128x128xbf16>
    %cst_30 = arith.constant dense<0.000000e+00> : vector<128x128xf32>
    %42 = tpu.matmul %1, %41, %cst_30 {dimension_numbers = #tpu.dot_dimension_numbers<[1], [0], [0], [1], [0, 0, 1, 1], [], []>} : vector<128x128xbf16>, vector<128x128xbf16>, vector<128x128xf32> -> vector<128x128xf32>
    %c2_31 = arith.constant 2 : index
    %c0_32 = arith.constant 0 : index
    %43 = vector.load %arg6[%c2_31, %c0_32] : memref<5x128xf32, #tpu.memory_space<vmem>>, vector<1x128xf32>
    %c2_33 = arith.constant 2 : index
    %c0_34 = arith.constant 0 : index
    %44 = vector.load %arg7[%c2_33, %c0_34] : memref<5x128xf32, #tpu.memory_space<vmem>>, vector<1x128xf32>
    %c2_35 = arith.constant 2 : index
    %c0_36 = arith.constant 0 : index
    %45 = vector.load %arg5[%c2_35, %c0_36] : memref<5x128xf32, #tpu.memory_space<vmem>>, vector<1x128xf32>
    %46 = vector.broadcast %45 : vector<1x128xf32> to vector<128x128xf32>
    %47 = arith.addf %42, %46 : vector<128x128xf32>
    %cst_37 = arith.constant 0.000000e+00 : f32
    %48 = vector.broadcast %cst_37 : f32 to vector<128x128xf32>
    %49 = arith.maximumf %47, %48 : vector<128x128xf32>
    %50 = vector.broadcast %43 : vector<1x128xf32> to vector<128x128xf32>
    %51 = arith.mulf %49, %50 : vector<128x128xf32>
    %52 = vector.broadcast %44 : vector<1x128xf32> to vector<128x128xf32>
    %53 = arith.addf %51, %52 : vector<128x128xf32>
    %54 = arith.truncf %53 : vector<128x128xf32> to vector<128x128xbf16>
    %c3 = arith.constant 3 : index
    %c0_38 = arith.constant 0 : index
    %c0_39 = arith.constant 0 : index
    %55 = vector.load %arg4[%c3, %c0_38, %c0_39] : memref<5x128x128xbf16, #tpu.memory_space<vmem>>, vector<1x128x128xbf16>
    %56 = vector.shape_cast %55 : vector<1x128x128xbf16> to vector<128x128xbf16>
    %cst_40 = arith.constant dense<0.000000e+00> : vector<128x128xf32>
    %57 = tpu.matmul %54, %56, %cst_40 {dimension_numbers = #tpu.dot_dimension_numbers<[1], [0], [0], [1], [0, 0, 1, 1], [], []>} : vector<128x128xbf16>, vector<128x128xbf16>, vector<128x128xf32> -> vector<128x128xf32>
    %58 = arith.truncf %57 : vector<128x128xf32> to vector<128x128xbf16>
    %cst_41 = arith.constant dense<0.000000e+00> : vector<128x128xf32>
    %59 = tpu.matmul %1, %58, %cst_41 {dimension_numbers = #tpu.dot_dimension_numbers<[1], [0], [0], [1], [0, 0, 1, 1], [], []>} : vector<128x128xbf16>, vector<128x128xbf16>, vector<128x128xf32> -> vector<128x128xf32>
    %c3_42 = arith.constant 3 : index
    %c0_43 = arith.constant 0 : index
    %60 = vector.load %arg6[%c3_42, %c0_43] : memref<5x128xf32, #tpu.memory_space<vmem>>, vector<1x128xf32>
    %c3_44 = arith.constant 3 : index
    %c0_45 = arith.constant 0 : index
    %61 = vector.load %arg7[%c3_44, %c0_45] : memref<5x128xf32, #tpu.memory_space<vmem>>, vector<1x128xf32>
    %62 = vector.broadcast %60 : vector<1x128xf32> to vector<128x128xf32>
    %63 = arith.mulf %59, %62 : vector<128x128xf32>
    %64 = vector.broadcast %61 : vector<1x128xf32> to vector<128x128xf32>
    %65 = arith.addf %63, %64 : vector<128x128xf32>
    %cst_46 = arith.constant 0.000000e+00 : f32
    %66 = vector.broadcast %cst_46 : f32 to vector<128x128xf32>
    %67 = arith.maximumf %65, %66 : vector<128x128xf32>
    %68 = arith.truncf %67 : vector<128x128xf32> to vector<128x128xbf16>
    %c4 = arith.constant 4 : index
    %c0_47 = arith.constant 0 : index
    %c0_48 = arith.constant 0 : index
    %69 = vector.load %arg4[%c4, %c0_47, %c0_48] : memref<5x128x128xbf16, #tpu.memory_space<vmem>>, vector<1x128x128xbf16>
    %70 = vector.shape_cast %69 : vector<1x128x128xbf16> to vector<128x128xbf16>
    %cst_49 = arith.constant dense<0.000000e+00> : vector<128x128xf32>
    %71 = tpu.matmul %68, %70, %cst_49 {dimension_numbers = #tpu.dot_dimension_numbers<[1], [0], [0], [1], [0, 0, 1, 1], [], []>} : vector<128x128xbf16>, vector<128x128xbf16>, vector<128x128xf32> -> vector<128x128xf32>
    %72 = arith.truncf %71 : vector<128x128xf32> to vector<128x128xbf16>
    %cst_50 = arith.constant dense<0.000000e+00> : vector<128x128xf32>
    %73 = tpu.matmul %1, %72, %cst_50 {dimension_numbers = #tpu.dot_dimension_numbers<[1], [0], [0], [1], [0, 0, 1, 1], [], []>} : vector<128x128xbf16>, vector<128x128xbf16>, vector<128x128xf32> -> vector<128x128xf32>
    %c4_51 = arith.constant 4 : index
    %c0_52 = arith.constant 0 : index
    %74 = vector.load %arg6[%c4_51, %c0_52] : memref<5x128xf32, #tpu.memory_space<vmem>>, vector<1x128xf32>
    %c4_53 = arith.constant 4 : index
    %c0_54 = arith.constant 0 : index
    %75 = vector.load %arg7[%c4_53, %c0_54] : memref<5x128xf32, #tpu.memory_space<vmem>>, vector<1x128xf32>
    %76 = vector.broadcast %74 : vector<1x128xf32> to vector<128x128xf32>
    %77 = arith.mulf %73, %76 : vector<128x128xf32>
    %78 = vector.broadcast %75 : vector<1x128xf32> to vector<128x128xf32>
    %79 = arith.addf %77, %78 : vector<128x128xf32>
    %80 = arith.truncf %79 : vector<128x128xf32> to vector<128x128xbf16>
    %c0_55 = arith.constant 0 : index
    %c0_56 = arith.constant 0 : index
    %c0_57 = arith.constant 0 : index
    %81 = vector.load %arg3[%c0_55, %c0_56, %c0_57] : memref<1x1x128xbf16, #tpu.memory_space<vmem>>, vector<1x1x128xbf16>
    %82 = vector.shape_cast %81 : vector<1x1x128xbf16> to vector<1x128xbf16>
    %cst_58 = arith.constant dense<0.000000e+00> : vector<1x128xf32>
    %83 = tpu.matmul %82, %80, %cst_58 {dimension_numbers = #tpu.dot_dimension_numbers<[1], [0], [0], [1], [0, 0, 1, 1], [], []>} : vector<1x128xbf16>, vector<128x128xbf16>, vector<1x128xf32> -> vector<1x128xf32>
    %cst_59 = arith.constant 0.000000e+00 : f32
    %84 = vector.broadcast %cst_59 : f32 to vector<1x128xf32>
    %85 = arith.maximumf %83, %84 : vector<1x128xf32>
    %86 = arith.truncf %85 : vector<1x128xf32> to vector<1x128xbf16>
    %c0_60 = arith.constant 0 : index
    %c0_61 = arith.constant 0 : index
    %87 = vector.load %arg8[%c0_60, %c0_61] : memref<128x128xbf16, #tpu.memory_space<vmem>>, vector<128x128xbf16>
    %cst_62 = arith.constant dense<0.000000e+00> : vector<1x128xf32>
    %88 = tpu.matmul %86, %87, %cst_62 {dimension_numbers = #tpu.dot_dimension_numbers<[1], [0], [0], [1], [0, 0, 1, 1], [], []>} : vector<1x128xbf16>, vector<128x128xbf16>, vector<1x128xf32> -> vector<1x128xf32>
    %c0_63 = arith.constant 0 : index
    %c0_64 = arith.constant 0 : index
    %89 = vector.load %arg9[%c0_63, %c0_64] : memref<1x128xf32, #tpu.memory_space<vmem>>, vector<1x128xf32>
    %90 = arith.addf %88, %89 : vector<1x128xf32>
    %cst_65 = arith.constant 0.000000e+00 : f32
    %91 = vector.broadcast %cst_65 : f32 to vector<1x128xf32>
    %92 = arith.maximumf %90, %91 : vector<1x128xf32>
    %93 = arith.truncf %92 : vector<1x128xf32> to vector<1x128xbf16>
    %c0_66 = arith.constant 0 : index
    %c0_67 = arith.constant 0 : index
    %94 = vector.load %arg10[%c0_66, %c0_67] : memref<128x128xbf16, #tpu.memory_space<vmem>>, vector<128x128xbf16>
    %cst_68 = arith.constant dense<0.000000e+00> : vector<1x128xf32>
    %95 = tpu.matmul %93, %94, %cst_68 {dimension_numbers = #tpu.dot_dimension_numbers<[1], [0], [0], [1], [0, 0, 1, 1], [], []>} : vector<1x128xbf16>, vector<128x128xbf16>, vector<1x128xf32> -> vector<1x128xf32>
    %c0_69 = arith.constant 0 : index
    %c0_70 = arith.constant 0 : index
    %96 = vector.load %arg11[%c0_69, %c0_70] : memref<1x128xf32, #tpu.memory_space<vmem>>, vector<1x128xf32>
    %97 = arith.addf %95, %96 : vector<1x128xf32>
    %c0_71 = arith.constant 0 : index
    %c0_72 = arith.constant 0 : index
    %c0_73 = arith.constant 0 : index
    %98 = vector.load %arg12[%c0_71, %c0_72, %c0_73] : memref<1x1x128xf32, #tpu.memory_space<vmem>>, vector<1x1x128xf32>
    %99 = vector.shape_cast %98 : vector<1x1x128xf32> to vector<1x128xf32>
    %100 = vector.shape_cast %97 : vector<1x128xf32> to vector<1x1x128xf32>
    tpu.vector_store %arg12[%c0_71, %c0_72, %c0_73], %100 {strides = array<i32>} : memref<1x1x128xf32, #tpu.memory_space<vmem>>, vector<1x1x128xf32>,
    return
  }
  func.func @transform_0(%arg0: i32) -> (i32, i32, i32) {
    %c0_i32 = arith.constant 0 : i32
    %c0_i32_0 = arith.constant 0 : i32
    %c0_i32_1 = arith.constant 0 : i32
    return %arg0, %c0_i32, %c0_i32_0 : i32, i32, i32
  }
  func.func @transform_1(%arg0: i32) -> (i32, i32, i32) {
    %c0_i32 = arith.constant 0 : i32
    %c0_i32_0 = arith.constant 0 : i32
    %c0_i32_1 = arith.constant 0 : i32
    return %arg0, %c0_i32, %c0_i32_0 : i32, i32, i32
  }
  func.func @transform_2(%arg0: i32) -> (i32, i32, i32) {
    %c0_i32 = arith.constant 0 : i32
    %c0_i32_0 = arith.constant 0 : i32
    %c0_i32_1 = arith.constant 0 : i32
    return %arg0, %c0_i32, %c0_i32_0 : i32, i32, i32
  }
  func.func @transform_3(%arg0: i32) -> (i32, i32, i32) {
    %c0_i32 = arith.constant 0 : i32
    %c0_i32_0 = arith.constant 0 : i32
    %c0_i32_1 = arith.constant 0 : i32
    %c0_i32_2 = arith.constant 0 : i32
    return %c0_i32, %c0_i32_0, %c0_i32_1 : i32, i32, i32
  }
  func.func @transform_4(%arg0: i32) -> (i32, i32) {
    %c0_i32 = arith.constant 0 : i32
    %c0_i32_0 = arith.constant 0 : i32
    %c0_i32_1 = arith.constant 0 : i32
    return %c0_i32, %c0_i32_0 : i32, i32
  }
  func.func @transform_5(%arg0: i32) -> (i32, i32) {
    %c0_i32 = arith.constant 0 : i32
    %c0_i32_0 = arith.constant 0 : i32
    %c0_i32_1 = arith.constant 0 : i32
    return %c0_i32, %c0_i32_0 : i32, i32
  }
  func.func @transform_6(%arg0: i32) -> (i32, i32) {
    %c0_i32 = arith.constant 0 : i32
    %c0_i32_0 = arith.constant 0 : i32
    %c0_i32_1 = arith.constant 0 : i32
    return %c0_i32, %c0_i32_0 : i32, i32
  }
  func.func @transform_7(%arg0: i32) -> (i32, i32) {
    %c0_i32 = arith.constant 0 : i32
    %c0_i32_0 = arith.constant 0 : i32
    %c0_i32_1 = arith.constant 0 : i32
    return %c0_i32, %c0_i32_0 : i32, i32
  }
  func.func @transform_8(%arg0: i32) -> (i32, i32) {
    %c0_i32 = arith.constant 0 : i32
    %c0_i32_0 = arith.constant 0 : i32
    %c0_i32_1 = arith.constant 0 : i32
    return %c0_i32, %c0_i32_0 : i32, i32
  }
  func.func @transform_9(%arg0: i32) -> (i32, i32) {
    %c0_i32 = arith.constant 0 : i32
    %c0_i32_0 = arith.constant 0 : i32
    %c0_i32_1 = arith.constant 0 : i32
    return %c0_i32, %c0_i32_0 : i32, i32
  }
  func.func @transform_10(%arg0: i32) -> (i32, i32) {
    %c0_i32 = arith.constant 0 : i32
    %c0_i32_0 = arith.constant 0 : i32
    %c0_i32_1 = arith.constant 0 : i32
    return %c0_i32, %c0_i32_0 : i32, i32
  }
  func.func @transform_11(%arg0: i32) -> (i32, i32, i32) {
    %c0_i32 = arith.constant 0 : i32
    %c0_i32_0 = arith.constant 0 : i32
    %c0_i32_1 = arith.constant 0 : i32
    return %arg0, %c0_i32, %c0_i32_0 : i32, i32, i32
  }
}

</mosaic_0001>

<bundles_post_ra>
// kernel: gcn_forward.1
= control target key start
LH: loop header
LB: loop body
LE: loop exit
PB: predicated region body
PF: predicated region fallthrough
CT: control target
= control target key end

     0   :  { %s3422_s17 = smov 0   ;;  %s3988_s0 = inlined_call_operand.vmem [shape: bf16[4,128,128], index: 0, kind: input, shape index: {}]   ;;  %s3989_s1 = inlined_call_operand.vmem [shape: bf16[4,128,128], index: 1, kind: input, shape index: {}]   ;;  %s3990_s2 = inlined_call_operand.vmem [shape: bf16[4,1,128], index: 2, kind: input, shape index: {}]   ;;  %s3991_s3 = inlined_call_operand.vmem [shape: bf16[5,128,128], index: 3, kind: input, shape index: {}]   ;;  %s3992_s4 = inlined_call_operand.vmem [shape: f32[5,128], index: 4, kind: input, shape index: {}]   ;;  %s3993_s5 = inlined_call_operand.vmem [shape: f32[5,128], index: 5, kind: input, shape index: {}]   ;;  %s3994_s6 = inlined_call_operand.vmem [shape: f32[5,128], index: 6, kind: input, shape index: {}]   ;;  %s3995_s7 = inlined_call_operand.vmem [shape: bf16[128,128], index: 7, kind: input, shape index: {}]   ;;  %s3996_s8 = inlined_call_operand.vmem [shape: f32[1,128], index: 8, kind: input, shape index: {}]   ;;  %s3997_s9 = inlined_call_operand.vmem [shape: bf16[128,128], index: 9, kind: input, shape index: {}]   ;;  %s3998_s10 = inlined_call_operand.vmem [shape: f32[1,128], index: 10, kind: input, shape index: {}]   ;;  %s3999_s11 = inlined_call_operand.vmem [shape: f32[4,1,128], index: 11, kind: output, shape index: {}]  }
   0x1 LB: > { %s2533_s18 = sadd.s32 4294967295, %s3358_s17   ;;  %p2537_p0 = scmp.ge.s32.totalorder %s3358_s17, 1  ;;  %s3358_s17 = sphi %s3422_s17, %s21_s17  }
   0x2   : > { %p355_p1 = scmp.lt.s32.totalorder %s3358_s17, 5 }
   0x4   : > { %p356_p2 = pnand %p2537_p0, %p355_p1 }
   0x5   : > { %v3272_v0 = vld [vmem:[%s3991_s3] sm:$0xff] (!%p356_p2)   ;;  %p401_p3 = scmp.lt.s32.totalorder (!%p356_p2), %s2533_s18, 3  ;;  %v3273_v1 = vld [vmem:[%s3991_s3 + $0x8] sm:$0xff] (!%p356_p2)   ;;  %v3274_v2 = vld [vmem:[%s3991_s3 + $0x10] sm:$0xff] (!%p356_p2)   ;;  %vm3361_vm0 = vmmov (!%p356_p2), 0  }
   0x6   : > { %359 = sbr.rel (%p356_p2) target bundleno = 3086 (0xc0e), region = 64  ;;  %2882 = vmatprep.subr.bf16.mxu0 (!%p356_p2), %v3272_v0  ;;  %v3275_v3 = vld [vmem:[%s3991_s3 + $0x18] sm:$0xff] (!%p356_p2)   ;;  %v3276_v5 = vld [vmem:[%s3991_s3 + $0x20] sm:$0xff] (!%p356_p2)   ;;  %v3277_v6 = vld [vmem:[%s3991_s3 + $0x28] sm:$0xff] (!%p356_p2)  }
   0x7   : > { %2883 = vmatpush3.bf16.msra.mxu0 (!%p356_p2), %v3272_v0  ;;  %v3278_v7 = vld [vmem:[%s3991_s3 + $0x30] sm:$0xff] (!%p356_p2)   ;;  %v3279_v8 = vld [vmem:[%s3991_s3 + $0x38] sm:$0xff] (!%p356_p2)   ;;  %v3296_v17 = vld [vmem:[%s3991_s3 + $0x40] sm:$0xff] (!%p356_p2)  }
   0x8   : > { %2884 = vmatprep.subr.bf16.mxu0 (!%p356_p2), %v3273_v1  ;;  %v3297_v18 = vld [vmem:[%s3991_s3 + $0x48] sm:$0xff] (!%p356_p2)   ;;  %v3298_v19 = vld [vmem:[%s3991_s3 + $0x50] sm:$0xff] (!%p356_p2)   ;;  %v3299_v20 = vld [vmem:[%s3991_s3 + $0x58] sm:$0xff] (!%p356_p2)  }
   0x9   : > { %v3300_v21 = vld [vmem:[%s3991_s3 + $0x60] sm:$0xff] (!%p356_p2)   ;;  %v3301_v53 = vld [vmem:[%s3991_s3 + $0x68] sm:$0xff] (!%p356_p2)   ;;  %v3302_v54 = vld [vmem:[%s3991_s3 + $0x70] sm:$0xff] (!%p356_p2)  }
   0xa   : > { %v3303_v55 = vld [vmem:[%s3991_s3 + $0x78] sm:$0xff] (!%p356_p2)   ;;  %v3535_v56 = vld [vmem:[%s3992_s4] ss:$0 sm:$0xff] (!%p356_p2) }
   0xb   : > { %2885 = vmatpush3.bf16.msra.mxu0 (!%p356_p2), %v3273_v1  ;;  %v3541_v60 = vld [vmem:[%s3993_s5] ss:$0 sm:$0xff] (!%p356_p2) }
   0xc   : > { %2886 = vmatprep.subr.bf16.mxu0 (!%p356_p2), %v3274_v2 }
   0xd   : > { %s4001_s18 = smov (!%p401_p3, %s2533_s18), 3 }
   0xe   : > { %s2693_s25 = sshll.u32 %s4001_s18, 6  ;;  %s413_s14 = scalar_lea.vmem %s3990_s2, %s4001_s18 }
   0xf   : > { %s3445_s28 = scalar_lea.vmem %s3989_s1, %s2693_s25  ;;  %2887 = vmatpush3.bf16.msra.mxu0 %v3274_v2  ;;  %s3460_s20 = scalar_lea.vmem %s3988_s0, %s2693_s25 }
  0x10   : > { %v3280_v4 = vld [vmem:[%s3445_s28] sm:$0xff]   ;;  %2888 = vmatprep.subr.bf16.mxu0 %v3275_v3  ;;  %v3281_v9 = vld [vmem:[%s3445_s28 + $0x8] sm:$0xff]   ;;  %v3282_v10 = vld [vmem:[%s3445_s28 + $0x10] sm:$0xff]   ;;  %s416_s25 = scalar_lea.vmem %s3999_s11, %s4001_s18 }
  0x11   : > { %2898 = vmatprep.mubr.bf16.mxu0 %v3280_v4  ;;  %v3283_v11 = vld [vmem:[%s3445_s28 + $0x18] sm:$0xff]   ;;  %v3284_v12 = vld [vmem:[%s3445_s28 + $0x20] sm:$0xff]   ;;  %v3285_v13 = vld [vmem:[%s3445_s28 + $0x28] sm:$0xff]  }
  0x12   : > { %v3286_v14 = vld [vmem:[%s3445_s28 + $0x30] sm:$0xff]   ;;  %v3287_v15 = vld [vmem:[%s3445_s28 + $0x38] sm:$0xff]   ;;  %v3476_v16 = vld [vmem:[%s3460_s20] sm:$0xff]  }
  0x13   : > { %2889 = vmatpush3.bf16.msra.mxu0 %v3275_v3  ;;  %2930 = vmatprep.mubr.bf16.mxu1 %v3476_v16  ;;  %v3495_v46 = vld [vmem:[%s3460_s20 + $0x8] sm:$0xff]   ;;  %v3498_v47 = vld [vmem:[%s3460_s20 + $0x10] sm:$0xff]   ;;  %v3503_v48 = vld [vmem:[%s3460_s20 + $0x18] sm:$0xff]  }
  0x14   : > { %2890 = vmatprep.subr.bf16.mxu0 %v3276_v5  ;;  %v3506_v49 = vld [vmem:[%s3460_s20 + $0x20] sm:$0xff]   ;;  %v3511_v50 = vld [vmem:[%s3460_s20 + $0x28] sm:$0xff]   ;;  %v3514_v51 = vld [vmem:[%s3460_s20 + $0x30] sm:$0xff]  }
  0x15   : > { %v3519_v52 = vld [vmem:[%s3460_s20 + $0x38] sm:$0xff]  }
  0x17   : > { %2891 = vmatpush3.bf16.msra.mxu0 %v3276_v5 }
  0x18   : > { %2892 = vmatprep.subr.bf16.mxu0 %v3277_v6 }
  0x1b   : > { %2893 = vmatpush3.bf16.msra.mxu0 %v3277_v6  ;;  %v3550_v6 = vld [vmem:[%s3994_s6] ss:$0 sm:$0xff] }
  0x1c   : > { %2894 = vmatprep.subr.bf16.mxu0 %v3278_v7 }
  0x1f   : > { %2895 = vmatpush3.bf16.msra.mxu0 %v3278_v7 }
  0x20   : > { %2896 = vmatprep.subr.bf16.mxu0 %v3279_v8 }
  0x23   : > { %2897 = vmatpush3.bf16.msra.mxu0 %v3279_v8 }
  0x24   : > { %2946 = vmatprep.subr.bf16.mxu0 %v3296_v17 }
  0x26   : > { %2899 = vmatmul.mubr.bf16.vlgmr.msra.gmra.mrb[0].mxu0 %v3281_v9 }
  0x27   : > { %2902 = vmatprep.mubr.bf16.mxu0 %v3282_v10  ;;  %2947 = vmatpush3.bf16.msra.mxu0 %v3296_v17 }
  0x28   : > { %2948 = vmatprep.subr.bf16.mxu0 %v3297_v18 }
  0x2b   : > { %2949 = vmatpush3.bf16.msra.mxu0 %v3297_v18 }
  0x2c   : > { %2950 = vmatprep.subr.bf16.mxu0 %v3298_v19 }
  0x2e   : > { %2903 = vmatmul.mubr.bf16.gmra.mrb[4].mxu0 %v3283_v11 }
  0x2f   : > { %2906 = vmatprep.mubr.bf16.mxu0 %v3284_v12  ;;  %2951 = vmatpush3.bf16.msra.mxu0 %v3298_v19 }
  0x30   : > { %2952 = vmatprep.subr.bf16.mxu0 %v3299_v20 }
  0x33   : > { %2953 = vmatpush3.bf16.msra.mxu0 %v3299_v20 }
  0x34   : > { %2954 = vmatprep.subr.bf16.mxu0 %v3300_v21 }
  0x36   : > { %2907 = vmatmul.mubr.bf16.gmra.mrb[8].mxu0 %v3285_v13 }
  0x37   : > { %2910 = vmatprep.mubr.bf16.mxu0 %v3286_v14  ;;  %2955 = vmatpush3.bf16.msra.mxu0 %v3300_v21 }
  0x38   : > { %2956 = vmatprep.subr.bf16.mxu0 %v3301_v53 }
  0x3b   : > { %2957 = vmatpush3.bf16.msra.mxu0 %v3301_v53 }
  0x3c   : > { %2958 = vmatprep.subr.bf16.mxu0 %v3302_v54 }
  0x3e   : > { %2911 = vmatmul.mubr.bf16.gmra.mrb[12].mxu0 %v3287_v15 }
  0x3f   : > { %2959 = vmatpush3.bf16.msra.mxu0 %v3302_v54 }
  0x40   : > { %2960 = vmatprep.subr.bf16.mxu0 %v3303_v55 }
  0x43   : > { %2961 = vmatpush3.bf16.msra.mxu0 %v3303_v55 }
  0xf9   : > { %v2900_v22 = vpop.f32.mrb[0].mxu0 }
  0xfa   : > { %v596_v23 = vpop.f32.mrb[1].mxu0 }
  0xfb   : > { %v2901_v24 = vpop.f32.mrb[2].mxu0 }
  0xfc   : > { %v660_v25 = vpack.c.bf16 %v2901_v24, %v2900_v22  ;;  %v599_v26 = vpop.f32.mrb[3].mxu0 }
  0xfd   : > { %v659_v27 = vpack.c.bf16 %v599_v26, %v596_v23 }
  0xff   : > { %2914 = vmatprep.subr.bf16.mxu1 %v659_v27 }
 0x100   : > { %2915 = vmatpush3.bf16.msra.mxu1 %v659_v27 }
 0x101   : > { %v2904_v28 = vpop.f32.mrb[4].mxu0  ;;  %2916 = vmatprep.subr.bf16.mxu1 %v660_v25 }
 0x102   : > { %v612_v29 = vpop.f32.mrb[5].mxu0 }
 0x103   : > { %v2905_v30 = vpop.f32.mrb[6].mxu0 }
 0x104   : > { %v662_v31 = vpack.c.bf16 %v2905_v30, %v2904_v28  ;;  %v615_v32 = vpop.f32.mrb[7].mxu0  ;;  %2917 = vmatpush3.bf16.msra.mxu1 %v660_v25 }
 0x105   : > { %v661_v33 = vpack.c.bf16 %v615_v32, %v612_v29 }
 0x107   : > { %2918 = vmatprep.subr.bf16.mxu1 %v661_v33 }
 0x108   : > { %2919 = vmatpush3.bf16.msra.mxu1 %v661_v33 }
 0x109   : > { %v2908_v34 = vpop.f32.mrb[8].mxu0  ;;  %2920 = vmatprep.subr.bf16.mxu1 %v662_v31 }
 0x10a   : > { %v628_v35 = vpop.f32.mrb[9].mxu0 }
 0x10b   : > { %v2909_v36 = vpop.f32.mrb[10].mxu0 }
 0x10c   : > { %v664_v37 = vpack.c.bf16 %v2909_v36, %v2908_v34  ;;  %v631_v38 = vpop.f32.mrb[11].mxu0  ;;  %2921 = vmatpush3.bf16.msra.mxu1 %v662_v31 }
 0x10d   : > { %v663_v39 = vpack.c.bf16 %v631_v38, %v628_v35 }
 0x10f   : > { %2922 = vmatprep.subr.bf16.mxu1 %v663_v39 }
 0x110   : > { %2923 = vmatpush3.bf16.msra.mxu1 %v663_v39 }
 0x111   : > { %v2912_v40 = vpop.f32.mrb[12].mxu0  ;;  %2924 = vmatprep.subr.bf16.mxu1 %v664_v37 }
 0x112   : > { %v644_v41 = vpop.f32.mrb[13].mxu0 }
 0x113   : > { %v2913_v42 = vpop.f32.mrb[14].mxu0 }
 0x114   : > { %v666_v43 = vpack.c.bf16 %v2913_v42, %v2912_v40  ;;  %v647_v44 = vpop.f32.mrb[15].mxu0  ;;  %2925 = vmatpush3.bf16.msra.mxu1 %v664_v37 }
 0x115   : > { %v665_v45 = vpack.c.bf16 %v647_v44, %v644_v41 }
 0x117   : > { %2926 = vmatprep.subr.bf16.mxu1 %v665_v45 }
 0x118   : > { %2927 = vmatpush3.bf16.msra.mxu1 %v665_v45 }
 0x119   : > { %2928 = vmatprep.subr.bf16.mxu1 %v666_v43 }
 0x11c   : > { %2929 = vmatpush3.bf16.msra.mxu1 %v666_v43 }
 0x11f   : > { %2931 = vmatmul.mubr.bf16.vlgmr.msra.gmra.mrb[0].mxu1 %v3495_v46 }
 0x120   : > { %2934 = vmatprep.mubr.bf16.mxu1 %v3498_v47 }
 0x127   : > { %2935 = vmatmul.mubr.bf16.gmra.mrb[4].mxu1 %v3503_v48 }
 0x128   : > { %2938 = vmatprep.mubr.bf16.mxu1 %v3506_v49 }
 0x12f   : > { %2939 = vmatmul.mubr.bf16.gmra.mrb[8].mxu1 %v3511_v50 }
 0x130   : > { %2942 = vmatprep.mubr.bf16.mxu1 %v3514_v51 }
 0x137   : > { %2943 = vmatmul.mubr.bf16.gmra.mrb[12].mxu1 %v3519_v52 }
 0x138   : > { %2994 = vmatprep.mubr.bf16.mxu1 %v3476_v16 }
 0x1f2   : > { %v2932_v57 = vpop.f32.mrb[0].mxu1 }
 0x1f3   : > { %v765_v58 = vadd.f32 %v2932_v57, %v3535_v56  ;;  %v756_v59 = vpop.f32.mrb[1].mxu1 }
 0x1f4   : > { %v757_v61 = vadd.f32 %v3535_v56, %v756_v59  ;;  %v2933_v62 = vpop.f32.mrb[2].mxu1 }
 0x1f5   : > { %v821_v63 = vmax.f32 %v765_v58, 0.0  ;;  %v768_v0 = vadd.f32 %v2933_v62, %v3535_v56  ;;  %v759_v1 = vpop.f32.mrb[3].mxu1 }
 0x1f6   : > { %v819_v2 = vmax.f32 %v757_v61, 0.0  ;;  %v760_v3 = vadd.f32 %v3535_v56, %v759_v1 }
 0x1f7   : > { %v841_v4 = vmul.f32 %v3541_v60, %v821_v63  ;;  %v822_v5 = vmax.f32 %v768_v0, 0.0 }
 0x1f8   : > { %v839_v7 = vmul.f32 %v3541_v60, %v819_v2  ;;  %v820_v8 = vmax.f32 %v760_v3, 0.0 }
 0x1f9   : > { %v842_v9 = vmul.f32 %v3541_v60, %v822_v5  ;;  %v861_v12 = vadd.f32 %v3550_v6, %v841_v4 }
 0x1fa   : > { %v840_v10 = vmul.f32 %v3541_v60, %v820_v8  ;;  %v2936_v11 = vpop.f32.mrb[4].mxu1  ;;  %v859_v17 = vadd.f32 %v3550_v6, %v839_v7 }
 0x1fb   : > { %v862_v13 = vadd.f32 %v3550_v6, %v842_v9  ;;  %v781_v14 = vadd.f32 %v2936_v11, %v3535_v56  ;;  %v772_v15 = vpop.f32.mrb[5].mxu1 }
 0x1fc   : > { %v860_v18 = vadd.f32 %v3550_v6, %v840_v10  ;;  %v773_v19 = vadd.f32 %v3535_v56, %v772_v15  ;;  %v2937_v20 = vpop.f32.mrb[6].mxu1 }
 0x1fd   : > { %v876_v21 = vpack.c.bf16 %v862_v13, %v861_v12  ;;  %v825_v22 = vmax.f32 %v781_v14, 0.0  ;;  %v784_v23 = vadd.f32 %v2937_v20, %v3535_v56  ;;  %v775_v24 = vpop.f32.mrb[7].mxu1 }
 0x1fe   : > { %v823_v25 = vmax.f32 %v773_v19, 0.0  ;;  %v776_v26 = vadd.f32 %v3535_v56, %v775_v24  ;;  %v875_v27 = vpack.c.bf16 %v860_v18, %v859_v17 }
 0x1ff   : > { %v845_v28 = vmul.f32 %v3541_v60, %v825_v22  ;;  %v826_v29 = vmax.f32 %v784_v23, 0.0 }
 0x200   : > { %v843_v30 = vmul.f32 %v3541_v60, %v823_v25  ;;  %v824_v31 = vmax.f32 %v776_v26, 0.0  ;;  %2962 = vmatprep.mubr.bf16.mxu0 %v875_v27 }
 0x201   : > { %v846_v32 = vmul.f32 %v3541_v60, %v826_v29  ;;  %2963 = vmatmul.mubr.bf16.vlgmr.msra.gmra.mrb[16].mxu0 %v876_v21  ;;  %v865_v35 = vadd.f32 %v3550_v6, %v845_v28 }
 0x202   : > { %v844_v33 = vmul.f32 %v3541_v60, %v824_v31  ;;  %v2940_v34 = vpop.f32.mrb[8].mxu1  ;;  %v863_v39 = vadd.f32 %v3550_v6, %v843_v30  ;;  %v3304_v30 = vld [vmem:[%s3991_s3 + $0x80] sm:$0xff]   ;;  %v3306_v31 = vld [vmem:[%s3991_s3 + $0x90] sm:$0xff]  }
 0x203   : > { %v866_v36 = vadd.f32 %v3550_v6, %v846_v32  ;;  %v797_v37 = vadd.f32 %v2940_v34, %v3535_v56  ;;  %v788_v38 = vpop.f32.mrb[9].mxu1  ;;  %3010 = vmatprep.subr.bf16.mxu0 %v3304_v30  ;;  %v3308_v32 = vld [vmem:[%s3991_s3 + $0xa0] sm:$0xff]  }
 0x204   : > { %v864_v40 = vadd.f32 %v3550_v6, %v844_v33  ;;  %v789_v41 = vadd.f32 %v3535_v56, %v788_v38  ;;  %v2941_v42 = vpop.f32.mrb[10].mxu1  ;;  %3011 = vmatpush3.bf16.msra.mxu0 %v3304_v30 }
 0x205   : > { %v829_v43 = vmax.f32 %v797_v37, 0.0  ;;  %v800_v44 = vadd.f32 %v2941_v42, %v3535_v56  ;;  %v791_v45 = vpop.f32.mrb[11].mxu1  ;;  %v878_v53 = vpack.c.bf16 %v866_v36, %v865_v35 }
 0x206   : > { %v827_v54 = vmax.f32 %v789_v41, 0.0  ;;  %v792_v55 = vadd.f32 %v3535_v56, %v791_v45  ;;  %v877_v57 = vpack.c.bf16 %v864_v40, %v863_v39 }
 0x207   : > { %v849_v58 = vmul.f32 %v3541_v60, %v829_v43  ;;  %v830_v59 = vmax.f32 %v800_v44, 0.0 }
 0x208   : > { %v847_v61 = vmul.f32 %v3541_v60, %v827_v54  ;;  %v828_v62 = vmax.f32 %v792_v55, 0.0  ;;  %2966 = vmatprep.mubr.bf16.mxu0 %v877_v57 }
 0x209   : > { %v850_v63 = vmul.f32 %v3541_v60, %v830_v59  ;;  %2967 = vmatmul.mubr.bf16.gmra.mrb[20].mxu0 %v878_v53  ;;  %v869_v2 = vadd.f32 %v3550_v6, %v849_v58 }
 0x20a   : > { %v848_v0 = vmul.f32 %v3541_v60, %v828_v62  ;;  %v2944_v1 = vpop.f32.mrb[12].mxu1  ;;  %v867_v7 = vadd.f32 %v3550_v6, %v847_v61 }
 0x20b   : > { %v870_v3 = vadd.f32 %v3550_v6, %v850_v63  ;;  %v813_v4 = vadd.f32 %v2944_v1, %v3535_v56  ;;  %v804_v5 = vpop.f32.mrb[13].mxu1 }
 0x20c   : > { %v868_v8 = vadd.f32 %v3550_v6, %v848_v0  ;;  %v805_v9 = vadd.f32 %v3535_v56, %v804_v5  ;;  %v2945_v10 = vpop.f32.mrb[14].mxu1  ;;  %v3630_v5 = vld [vmem:[%s3992_s4 + $0x1] ss:$0 sm:$0xff] }
 0x20d   : > { %v833_v11 = vmax.f32 %v813_v4, 0.0  ;;  %v816_v12 = vadd.f32 %v2945_v10, %v3535_v56  ;;  %v807_v13 = vpop.f32.mrb[15].mxu1  ;;  %v880_v14 = vpack.c.bf16 %v870_v3, %v869_v2  ;;  %v3309_v2 = vld [vmem:[%s3991_s3 + $0xa8] sm:$0xff]   ;;  %v3310_v3 = vld [vmem:[%s3991_s3 + $0xb0] sm:$0xff]   ;;  %v3311_v4 = vld [vmem:[%s3991_s3 + $0xb8] sm:$0xff]  }
 0x20e   : > { %v831_v15 = vmax.f32 %v805_v9, 0.0  ;;  %v808_v17 = vadd.f32 %v3535_v56, %v807_v13  ;;  %v879_v18 = vpack.c.bf16 %v868_v8, %v867_v7  ;;  %v3636_v10 = vld [vmem:[%s3993_s5 + $0x1] ss:$0 sm:$0xff] }
 0x20f   : > { %v853_v19 = vmul.f32 %v3541_v60, %v833_v11  ;;  %v834_v20 = vmax.f32 %v816_v12, 0.0 }
 0x210   : > { %v851_v21 = vmul.f32 %v3541_v60, %v831_v15  ;;  %v832_v22 = vmax.f32 %v808_v17, 0.0  ;;  %2970 = vmatprep.mubr.bf16.mxu0 %v879_v18 }
 0x211   : > { %v854_v23 = vmul.f32 %v3541_v60, %v834_v20  ;;  %2971 = vmatmul.mubr.bf16.gmra.mrb[24].mxu0 %v880_v14  ;;  %v873_v25 = vadd.f32 %v3550_v6, %v853_v19 }
 0x212   : > { %v852_v24 = vmul.f32 %v3541_v60, %v832_v22  ;;  %v871_v27 = vadd.f32 %v3550_v6, %v851_v21  ;;  %v3305_v60 = vld [vmem:[%s3991_s3 + $0x88] sm:$0xff]   ;;  %v3645_v21 = vld [vmem:[%s3994_s6 + $0x1] ss:$0 sm:$0xff] }
 0x213   : > { %v874_v26 = vadd.f32 %v3550_v6, %v854_v23  ;;  %3012 = vmatprep.subr.bf16.mxu0 %v3305_v60 }
 0x214   : > { %v872_v56 = vadd.f32 %v3550_v6, %v852_v24  ;;  %3013 = vmatpush3.bf16.msra.mxu0 %v3305_v60  ;;  %v3307_v6 = vld [vmem:[%s3991_s3 + $0x98] sm:$0xff]  }
 0x215   : > { %v882_v28 = vpack.c.bf16 %v874_v26, %v873_v25  ;;  %3014 = vmatprep.subr.bf16.mxu0 %v3306_v31 }
 0x216   : > { %v881_v29 = vpack.c.bf16 %v872_v56, %v871_v27 }
 0x218   : > { %2974 = vmatprep.mubr.bf16.mxu0 %v881_v29  ;;  %3015 = vmatpush3.bf16.msra.mxu0 %v3306_v31 }
 0x219   : > { %2975 = vmatmul.mubr.bf16.gmra.mrb[28].mxu0 %v882_v28  ;;  %3016 = vmatprep.subr.bf16.mxu0 %v3307_v6 }
 0x21c   : > { %3017 = vmatpush3.bf16.msra.mxu0 %v3307_v6 }
 0x21d   : > { %3018 = vmatprep.subr.bf16.mxu0 %v3308_v32 }
 0x220   : > { %3019 = vmatpush3.bf16.msra.mxu0 %v3308_v32 }
 0x221   : > { %3020 = vmatprep.subr.bf16.mxu0 %v3309_v2 }
 0x224   : > { %3021 = vmatpush3.bf16.msra.mxu0 %v3309_v2 }
 0x225   : > { %3022 = vmatprep.subr.bf16.mxu0 %v3310_v3 }
 0x228   : > { %3023 = vmatpush3.bf16.msra.mxu0 %v3310_v3 }
 0x229   : > { %3024 = vmatprep.subr.bf16.mxu0 %v3311_v4 }
 0x22c   : > { %3025 = vmatpush3.bf16.msra.mxu0 %v3311_v4 }
 0x2d4   : > { %v2964_v33 = vpop.f32.mrb[16].mxu0 }
 0x2d5   : > { %v982_v34 = vpop.f32.mrb[17].mxu0 }
 0x2d6   : > { %v2965_v35 = vpop.f32.mrb[18].mxu0 }
 0x2d7   : > { %v1046_v36 = vpack.c.bf16 %v2965_v35, %v2964_v33  ;;  %v985_v37 = vpop.f32.mrb[19].mxu0 }
 0x2d8   : > { %v1045_v38 = vpack.c.bf16 %v985_v37, %v982_v34 }
 0x2da   : > { %2978 = vmatprep.subr.bf16.mxu1 %v1045_v38 }
 0x2db   : > { %2979 = vmatpush3.bf16.msra.mxu1 %v1045_v38 }
 0x2dc   : > { %v2968_v39 = vpop.f32.mrb[20].mxu0  ;;  %2980 = vmatprep.subr.bf16.mxu1 %v1046_v36 }
 0x2dd   : > { %v998_v40 = vpop.f32.mrb[21].mxu0 }
 0x2de   : > { %v2969_v41 = vpop.f32.mrb[22].mxu0 }
 0x2df   : > { %v1048_v42 = vpack.c.bf16 %v2969_v41, %v2968_v39  ;;  %v1001_v43 = vpop.f32.mrb[23].mxu0  ;;  %2981 = vmatpush3.bf16.msra.mxu1 %v1046_v36 }
 0x2e0   : > { %v1047_v44 = vpack.c.bf16 %v1001_v43, %v998_v40 }
 0x2e2   : > { %2982 = vmatprep.subr.bf16.mxu1 %v1047_v44 }
 0x2e3   : > { %2983 = vmatpush3.bf16.msra.mxu1 %v1047_v44 }
 0x2e4   : > { %v2972_v45 = vpop.f32.mrb[24].mxu0  ;;  %2984 = vmatprep.subr.bf16.mxu1 %v1048_v42 }
 0x2e5   : > { %v1014_v53 = vpop.f32.mrb[25].mxu0 }
 0x2e6   : > { %v2973_v54 = vpop.f32.mrb[26].mxu0 }
 0x2e7   : > { %v1050_v55 = vpack.c.bf16 %v2973_v54, %v2972_v45  ;;  %v1017_v57 = vpop.f32.mrb[27].mxu0  ;;  %2985 = vmatpush3.bf16.msra.mxu1 %v1048_v42 }
 0x2e8   : > { %v1049_v58 = vpack.c.bf16 %v1017_v57, %v1014_v53 }
 0x2ea   : > { %2986 = vmatprep.subr.bf16.mxu1 %v1049_v58 }
 0x2eb   : > { %2987 = vmatpush3.bf16.msra.mxu1 %v1049_v58 }
 0x2ec   : > { %v2976_v59 = vpop.f32.mrb[28].mxu0  ;;  %2988 = vmatprep.subr.bf16.mxu1 %v1050_v55 }
 0x2ed   : > { %v1030_v61 = vpop.f32.mrb[29].mxu0 }
 0x2ee   : > { %v2977_v62 = vpop.f32.mrb[30].mxu0 }
 0x2ef   : > { %v1052_v63 = vpack.c.bf16 %v2977_v62, %v2976_v59  ;;  %v1033_v0 = vpop.f32.mrb[31].mxu0  ;;  %2989 = vmatpush3.bf16.msra.mxu1 %v1050_v55 }
 0x2f0   : > { %v1051_v1 = vpack.c.bf16 %v1033_v0, %v1030_v61 }
 0x2f2   : > { %2990 = vmatprep.subr.bf16.mxu1 %v1051_v1 }
 0x2f3   : > { %2991 = vmatpush3.bf16.msra.mxu1 %v1051_v1 }
 0x2f4   : > { %2992 = vmatprep.subr.bf16.mxu1 %v1052_v63 }
 0x2f7   : > { %2993 = vmatpush3.bf16.msra.mxu1 %v1052_v63 }
 0x2fa   : > { %2995 = vmatmul.mubr.bf16.vlgmr.msra.gmra.mrb[16].mxu1 %v3495_v46 }
 0x2fb   : > { %2998 = vmatprep.mubr.bf16.mxu1 %v3498_v47 }
 0x302   : > { %2999 = vmatmul.mubr.bf16.gmra.mrb[20].mxu1 %v3503_v48 }
 0x303   : > { %3002 = vmatprep.mubr.bf16.mxu1 %v3506_v49 }
 0x30a   : > { %3003 = vmatmul.mubr.bf16.gmra.mrb[24].mxu1 %v3511_v50 }
 0x30b   : > { %3006 = vmatprep.mubr.bf16.mxu1 %v3514_v51 }
 0x312   : > { %3007 = vmatmul.mubr.bf16.gmra.mrb[28].mxu1 %v3519_v52 }
 0x313   : > { %3058 = vmatprep.mubr.bf16.mxu1 %v3476_v16 }
 0x3cd   : > { %v2996_v7 = vpop.f32.mrb[16].mxu1 }
 0x3ce   : > { %v1103_v8 = vadd.f32 %v2996_v7, %v3630_v5  ;;  %v1094_v9 = vpop.f32.mrb[17].mxu1 }
 0x3cf   : > { %v1095_v11 = vadd.f32 %v3630_v5, %v1094_v9  ;;  %v2997_v12 = vpop.f32.mrb[18].mxu1 }
 0x3d0   : > { %v1159_v13 = vmax.f32 %v1103_v8, 0.0  ;;  %v1106_v14 = vadd.f32 %v2997_v12, %v3630_v5  ;;  %v1097_v15 = vpop.f32.mrb[19].mxu1 }
 0x3d1   : > { %v1157_v17 = vmax.f32 %v1095_v11, 0.0  ;;  %v1098_v18 = vadd.f32 %v3630_v5, %v1097_v15 }
 0x3d2   : > { %v1179_v19 = vmul.f32 %v3636_v10, %v1159_v13  ;;  %v1160_v20 = vmax.f32 %v1106_v14, 0.0 }
 0x3d3   : > { %v1177_v22 = vmul.f32 %v3636_v10, %v1157_v17  ;;  %v1158_v23 = vmax.f32 %v1098_v18, 0.0 }
 0x3d4   : > { %v1180_v24 = vmul.f32 %v3636_v10, %v1160_v20  ;;  %v1199_v27 = vadd.f32 %v3645_v21, %v1179_v19 }
 0x3d5   : > { %v1178_v25 = vmul.f32 %v3636_v10, %v1158_v23  ;;  %v3000_v26 = vpop.f32.mrb[20].mxu1  ;;  %v1197_v30 = vadd.f32 %v3645_v21, %v1177_v22 }
 0x3d6   : > { %v1200_v56 = vadd.f32 %v3645_v21, %v1180_v24  ;;  %v1119_v28 = vadd.f32 %v3000_v26, %v3630_v5  ;;  %v1110_v29 = vpop.f32.mrb[21].mxu1 }
 0x3d7   : > { %v1198_v60 = vadd.f32 %v3645_v21, %v1178_v25  ;;  %v1111_v31 = vadd.f32 %v3630_v5, %v1110_v29  ;;  %v3001_v6 = vpop.f32.mrb[22].mxu1 }
 0x3d8   : > { %v1214_v32 = vpack.c.bf16 %v1200_v56, %v1199_v27  ;;  %v1163_v33 = vmax.f32 %v1119_v28, 0.0  ;;  %v1122_v34 = vadd.f32 %v3001_v6, %v3630_v5  ;;  %v1113_v35 = vpop.f32.mrb[23].mxu1 }
 0x3d9   : > { %v1161_v36 = vmax.f32 %v1111_v31, 0.0  ;;  %v1114_v37 = vadd.f32 %v3630_v5, %v1113_v35  ;;  %v1213_v38 = vpack.c.bf16 %v1198_v60, %v1197_v30 }
 0x3da   : > { %v1183_v39 = vmul.f32 %v3636_v10, %v1163_v33  ;;  %v1164_v40 = vmax.f32 %v1122_v34, 0.0 }
 0x3db   : > { %v1181_v41 = vmul.f32 %v3636_v10, %v1161_v36  ;;  %v1162_v42 = vmax.f32 %v1114_v37, 0.0  ;;  %3026 = vmatprep.mubr.bf16.mxu0 %v1213_v38 }
 0x3dc   : > { %v1184_v43 = vmul.f32 %v3636_v10, %v1164_v40  ;;  %3027 = vmatmul.mubr.bf16.vlgmr.msra.gmra.mrb[32].mxu0 %v1214_v32  ;;  %v1203_v53 = vadd.f32 %v3645_v21, %v1183_v39 }
 0x3dd   : > { %v1182_v44 = vmul.f32 %v3636_v10, %v1162_v42  ;;  %v3004_v45 = vpop.f32.mrb[24].mxu1  ;;  %v1201_v58 = vadd.f32 %v3645_v21, %v1181_v41  ;;  %v3312_v41 = vld [vmem:[%s3991_s3 + $0xc0] sm:$0xff]   ;;  %v3314_v42 = vld [vmem:[%s3991_s3 + $0xd0] sm:$0xff]  }
 0x3de   : > { %v1204_v54 = vadd.f32 %v3645_v21, %v1184_v43  ;;  %v1135_v55 = vadd.f32 %v3004_v45, %v3630_v5  ;;  %v1126_v57 = vpop.f32.mrb[25].mxu1  ;;  %3074 = vmatprep.subr.bf16.mxu0 %v3312_v41  ;;  %v3316_v43 = vld [vmem:[%s3991_s3 + $0xe0] sm:$0xff]  }
 0x3df   : > { %v1202_v59 = vadd.f32 %v3645_v21, %v1182_v44  ;;  %v1127_v61 = vadd.f32 %v3630_v5, %v1126_v57  ;;  %v3005_v62 = vpop.f32.mrb[26].mxu1  ;;  %3075 = vmatpush3.bf16.msra.mxu0 %v3312_v41 }
 0x3e0   : > { %v1167_v63 = vmax.f32 %v1135_v55, 0.0  ;;  %v1138_v0 = vadd.f32 %v3005_v62, %v3630_v5  ;;  %v1129_v1 = vpop.f32.mrb[27].mxu1  ;;  %v1216_v2 = vpack.c.bf16 %v1204_v54, %v1203_v53 }
 0x3e1   : > { %v1165_v3 = vmax.f32 %v1127_v61, 0.0  ;;  %v1130_v4 = vadd.f32 %v3630_v5, %v1129_v1  ;;  %v1215_v7 = vpack.c.bf16 %v1202_v59, %v1201_v58 }
 0x3e2   : > { %v1187_v8 = vmul.f32 %v3636_v10, %v1167_v63  ;;  %v1168_v9 = vmax.f32 %v1138_v0, 0.0 }
 0x3e3   : > { %v1185_v11 = vmul.f32 %v3636_v10, %v1165_v3  ;;  %v1166_v12 = vmax.f32 %v1130_v4, 0.0  ;;  %3030 = vmatprep.mubr.bf16.mxu0 %v1215_v7 }
 0x3e4   : > { %v1188_v13 = vmul.f32 %v3636_v10, %v1168_v9  ;;  %3031 = vmatmul.mubr.bf16.gmra.mrb[36].mxu0 %v1216_v2  ;;  %v1207_v17 = vadd.f32 %v3645_v21, %v1187_v8 }
 0x3e5   : > { %v1186_v14 = vmul.f32 %v3636_v10, %v1166_v12  ;;  %v3008_v15 = vpop.f32.mrb[28].mxu1  ;;  %v1205_v22 = vadd.f32 %v3645_v21, %v1185_v11 }
 0x3e6   : > { %v1208_v18 = vadd.f32 %v3645_v21, %v1188_v13  ;;  %v1151_v19 = vadd.f32 %v3008_v15, %v3630_v5  ;;  %v1142_v20 = vpop.f32.mrb[29].mxu1 }
 0x3e7   : > { %v1206_v23 = vadd.f32 %v3645_v21, %v1186_v14  ;;  %v1143_v24 = vadd.f32 %v3630_v5, %v1142_v20  ;;  %v3009_v25 = vpop.f32.mrb[30].mxu1 }
 0x3e8   : > { %v1171_v26 = vmax.f32 %v1151_v19, 0.0  ;;  %v1154_v27 = vadd.f32 %v3009_v25, %v3630_v5  ;;  %v1145_v56 = vpop.f32.mrb[31].mxu1  ;;  %v1218_v28 = vpack.c.bf16 %v1208_v18, %v1207_v17  ;;  %v3317_v17 = vld [vmem:[%s3991_s3 + $0xe8] sm:$0xff]  }
 0x3e9   : > { %v1169_v29 = vmax.f32 %v1143_v24, 0.0  ;;  %v1146_v30 = vadd.f32 %v3630_v5, %v1145_v56  ;;  %v1217_v60 = vpack.c.bf16 %v1206_v23, %v1205_v22 }
 0x3ea   : > { %v1191_v31 = vmul.f32 %v3636_v10, %v1171_v26  ;;  %v1172_v6 = vmax.f32 %v1154_v27, 0.0  ;;  %v3740_v27 = vld [vmem:[%s3994_s6 + $0x2] ss:$0 sm:$0xff] }
 0x3eb   : > { %v1189_v32 = vmul.f32 %v3636_v10, %v1169_v29  ;;  %v1170_v33 = vmax.f32 %v1146_v30, 0.0  ;;  %3034 = vmatprep.mubr.bf16.mxu0 %v1217_v60 }
 0x3ec   : > { %v1192_v34 = vmul.f32 %v3636_v10, %v1172_v6  ;;  %3035 = vmatmul.mubr.bf16.gmra.mrb[40].mxu0 %v1218_v28  ;;  %v1211_v36 = vadd.f32 %v3645_v21, %v1191_v31 }
 0x3ed   : > { %v1190_v35 = vmul.f32 %v3636_v10, %v1170_v33  ;;  %v1209_v38 = vadd.f32 %v3645_v21, %v1189_v32  ;;  %v3313_v10 = vld [vmem:[%s3991_s3 + $0xc8] sm:$0xff]  }
 0x3ee   : > { %v1212_v37 = vadd.f32 %v3645_v21, %v1192_v34  ;;  %3076 = vmatprep.subr.bf16.mxu0 %v3313_v10 }
 0x3ef   : > { %v1210_v5 = vadd.f32 %v3645_v21, %v1190_v35  ;;  %3077 = vmatpush3.bf16.msra.mxu0 %v3313_v10  ;;  %v3315_v21 = vld [vmem:[%s3991_s3 + $0xd8] sm:$0xff]  }
 0x3f0   : > { %v1220_v39 = vpack.c.bf16 %v1212_v37, %v1211_v36  ;;  %3078 = vmatprep.subr.bf16.mxu0 %v3314_v42 }
 0x3f1   : > { %v1219_v40 = vpack.c.bf16 %v1210_v5, %v1209_v38 }
 0x3f3   : > { %3038 = vmatprep.mubr.bf16.mxu0 %v1219_v40  ;;  %3079 = vmatpush3.bf16.msra.mxu0 %v3314_v42 }
 0x3f4   : > { %3039 = vmatmul.mubr.bf16.gmra.mrb[44].mxu0 %v1220_v39  ;;  %3080 = vmatprep.subr.bf16.mxu0 %v3315_v21 }
 0x3f7   : > { %3081 = vmatpush3.bf16.msra.mxu0 %v3315_v21 }
 0x3f8   : > { %3082 = vmatprep.subr.bf16.mxu0 %v3316_v43 }
 0x3fb   : > { %3083 = vmatpush3.bf16.msra.mxu0 %v3316_v43 }
 0x3fc   : > { %3084 = vmatprep.subr.bf16.mxu0 %v3317_v17 }
 0x3ff   : > { %3085 = vmatpush3.bf16.msra.mxu0 %v3317_v17 }
 0x4af   : > { %v3028_v44 = vpop.f32.mrb[32].mxu0 }
 0x4b0   : > { %v1320_v45 = vpop.f32.mrb[33].mxu0 }
 0x4b1   : > { %v3029_v53 = vpop.f32.mrb[34].mxu0 }
 0x4b2   : > { %v1384_v54 = vpack.c.bf16 %v3029_v53, %v3028_v44  ;;  %v1323_v55 = vpop.f32.mrb[35].mxu0 }
 0x4b3   : > { %v1383_v57 = vpack.c.bf16 %v1323_v55, %v1320_v45 }
 0x4b5   : > { %3042 = vmatprep.subr.bf16.mxu1 %v1383_v57 }
 0x4b6   : > { %3043 = vmatpush3.bf16.msra.mxu1 %v1383_v57 }
 0x4b7   : > { %v3032_v58 = vpop.f32.mrb[36].mxu0  ;;  %3044 = vmatprep.subr.bf16.mxu1 %v1384_v54 }
 0x4b8   : > { %v1336_v59 = vpop.f32.mrb[37].mxu0 }
 0x4b9   : > { %v3033_v61 = vpop.f32.mrb[38].mxu0 }
 0x4ba   : > { %v1386_v62 = vpack.c.bf16 %v3033_v61, %v3032_v58  ;;  %v1339_v63 = vpop.f32.mrb[39].mxu0  ;;  %3045 = vmatpush3.bf16.msra.mxu1 %v1384_v54 }
 0x4bb   : > { %v1385_v0 = vpack.c.bf16 %v1339_v63, %v1336_v59 }
 0x4bd   : > { %3046 = vmatprep.subr.bf16.mxu1 %v1385_v0 }
 0x4be   : > { %3047 = vmatpush3.bf16.msra.mxu1 %v1385_v0 }
 0x4bf   : > { %v3036_v1 = vpop.f32.mrb[40].mxu0  ;;  %3048 = vmatprep.subr.bf16.mxu1 %v1386_v62 }
 0x4c0   : > { %v1352_v2 = vpop.f32.mrb[41].mxu0 }
 0x4c1   : > { %v3037_v3 = vpop.f32.mrb[42].mxu0 }
 0x4c2   : > { %v1388_v4 = vpack.c.bf16 %v3037_v3, %v3036_v1  ;;  %v1355_v7 = vpop.f32.mrb[43].mxu0  ;;  %3049 = vmatpush3.bf16.msra.mxu1 %v1386_v62 }
 0x4c3   : > { %v1387_v8 = vpack.c.bf16 %v1355_v7, %v1352_v2 }
 0x4c5   : > { %3050 = vmatprep.subr.bf16.mxu1 %v1387_v8 }
 0x4c6   : > { %3051 = vmatpush3.bf16.msra.mxu1 %v1387_v8 }
 0x4c7   : > { %v3040_v9 = vpop.f32.mrb[44].mxu0  ;;  %3052 = vmatprep.subr.bf16.mxu1 %v1388_v4 }
 0x4c8   : > { %v1368_v11 = vpop.f32.mrb[45].mxu0 }
 0x4c9   : > { %v3041_v12 = vpop.f32.mrb[46].mxu0 }
 0x4ca   : > { %v1390_v13 = vpack.c.bf16 %v3041_v12, %v3040_v9  ;;  %v1371_v14 = vpop.f32.mrb[47].mxu0  ;;  %3053 = vmatpush3.bf16.msra.mxu1 %v1388_v4 }
 0x4cb   : > { %v1389_v15 = vpack.c.bf16 %v1371_v14, %v1368_v11 }
 0x4cd   : > { %3054 = vmatprep.subr.bf16.mxu1 %v1389_v15 }
 0x4ce   : > { %3055 = vmatpush3.bf16.msra.mxu1 %v1389_v15 }
 0x4cf   : > { %3056 = vmatprep.subr.bf16.mxu1 %v1390_v13 }
 0x4d2   : > { %3057 = vmatpush3.bf16.msra.mxu1 %v1390_v13 }
 0x4d5   : > { %3059 = vmatmul.mubr.bf16.vlgmr.msra.gmra.mrb[32].mxu1 %v3495_v46  ;;  %v3318_v46 = vld [vmem:[%s3991_s3 + $0xf0] sm:$0xff]  }
 0x4d6   : > { %3062 = vmatprep.mubr.bf16.mxu1 %v3498_v47  ;;  %3086 = vmatprep.subr.bf16.mxu0 %v3318_v46  ;;  %v3319_v47 = vld [vmem:[%s3991_s3 + $0xf8] sm:$0xff]  }
 0x4d7   : > { %3087 = vmatpush3.bf16.msra.mxu0 %v3318_v46 }
 0x4d8   : > { %3088 = vmatprep.subr.bf16.mxu0 %v3319_v47 }
 0x4db   : > { %3089 = vmatpush3.bf16.msra.mxu0 %v3319_v47 }
 0x4dd   : > { %3063 = vmatmul.mubr.bf16.gmra.mrb[36].mxu1 %v3503_v48 }
 0x4de   : > { %3066 = vmatprep.mubr.bf16.mxu1 %v3506_v49 }
 0x4e5   : > { %3067 = vmatmul.mubr.bf16.gmra.mrb[40].mxu1 %v3511_v50 }
 0x4e6   : > { %3070 = vmatprep.mubr.bf16.mxu1 %v3514_v51  ;;  %v3731_v51 = vld [vmem:[%s3993_s5 + $0x2] ss:$0 sm:$0xff] }
 0x4ed   : > { %3071 = vmatmul.mubr.bf16.gmra.mrb[44].mxu1 %v3519_v52 }
 0x4ee   : > { %3122 = vmatprep.mubr.bf16.mxu1 %v3476_v16  ;;  %v3725_v16 = vld [vmem:[%s3992_s4 + $0x2] ss:$0 sm:$0xff] }
 0x5a8   : > { %v3060_v48 = vpop.f32.mrb[32].mxu1 }
 0x5a9   : > { %v1441_v49 = vadd.f32 %v3060_v48, %v3725_v16  ;;  %v1432_v50 = vpop.f32.mrb[33].mxu1 }
 0x5aa   : > { %v1433_v52 = vadd.f32 %v3725_v16, %v1432_v50  ;;  %v3061_v18 = vpop.f32.mrb[34].mxu1 }
 0x5ab   : > { %v1497_v19 = vmax.f32 %v1441_v49, 0.0  ;;  %v1444_v20 = vadd.f32 %v3061_v18, %v3725_v16  ;;  %v1435_v22 = vpop.f32.mrb[35].mxu1 }
 0x5ac   : > { %v1495_v23 = vmax.f32 %v1433_v52, 0.0  ;;  %v1436_v24 = vadd.f32 %v3725_v16, %v1435_v22 }
 0x5ad   : > { %v1517_v25 = vmul.f32 %v3731_v51, %v1497_v19  ;;  %v1498_v26 = vmax.f32 %v1444_v20, 0.0 }
 0x5ae   : > { %v1515_v56 = vmul.f32 %v3731_v51, %v1495_v23  ;;  %v1496_v28 = vmax.f32 %v1436_v24, 0.0 }
 0x5af   : > { %v1518_v29 = vmul.f32 %v3731_v51, %v1498_v26  ;;  %v1537_v31 = vadd.f32 %v3740_v27, %v1517_v25 }
 0x5b0   : > { %v1516_v30 = vmul.f32 %v3731_v51, %v1496_v28  ;;  %v3064_v60 = vpop.f32.mrb[36].mxu1  ;;  %v1535_v34 = vadd.f32 %v3740_v27, %v1515_v56 }
 0x5b1   : > { %v1538_v6 = vadd.f32 %v3740_v27, %v1518_v29  ;;  %v1457_v32 = vadd.f32 %v3064_v60, %v3725_v16  ;;  %v1448_v33 = vpop.f32.mrb[37].mxu1 }
 0x5b2   : > { %v1536_v35 = vadd.f32 %v3740_v27, %v1516_v30  ;;  %v1449_v36 = vadd.f32 %v3725_v16, %v1448_v33  ;;  %v3065_v37 = vpop.f32.mrb[38].mxu1 }
 0x5b3   : > { %v1552_v38 = vpack.c.bf16 %v1538_v6, %v1537_v31  ;;  %v1501_v5 = vmax.f32 %v1457_v32, 0.0  ;;  %v1460_v39 = vadd.f32 %v3065_v37, %v3725_v16  ;;  %v1451_v40 = vpop.f32.mrb[39].mxu1 }
 0x5b4   : > { %v1499_v41 = vmax.f32 %v1449_v36, 0.0  ;;  %v1452_v10 = vadd.f32 %v3725_v16, %v1451_v40  ;;  %v1551_v42 = vpack.c.bf16 %v1536_v35, %v1535_v34  ;;  %v3324_v40 = vld [vmem:[%s3991_s3 + $0x120] sm:$0xff]  }
 0x5b5   : > { %v1521_v21 = vmul.f32 %v3731_v51, %v1501_v5  ;;  %v1502_v43 = vmax.f32 %v1460_v39, 0.0  ;;  %v3320_v5 = vld [vmem:[%s3991_s3 + $0x100] sm:$0xff]   ;;  %v3322_v39 = vld [vmem:[%s3991_s3 + $0x110] sm:$0xff]  }
 0x5b6   : > { %v1519_v44 = vmul.f32 %v3731_v51, %v1499_v41  ;;  %v1500_v45 = vmax.f32 %v1452_v10, 0.0  ;;  %3090 = vmatprep.mubr.bf16.mxu0 %v1551_v42  ;;  %3138 = vmatprep.subr.bf16.mxu0 %v3320_v5 }
 0x5b7   : > { %v1522_v53 = vmul.f32 %v3731_v51, %v1502_v43  ;;  %3091 = vmatmul.mubr.bf16.vlgmr.msra.gmra.mrb[48].mxu0 %v1552_v38  ;;  %v1541_v57 = vadd.f32 %v3740_v27, %v1521_v21 }
 0x5b8   : > { %v1520_v54 = vmul.f32 %v3731_v51, %v1500_v45  ;;  %v3068_v55 = vpop.f32.mrb[40].mxu1  ;;  %v1539_v62 = vadd.f32 %v3740_v27, %v1519_v44  ;;  %3139 = vmatpush3.bf16.msra.mxu0 %v3320_v5 }
 0x5b9   : > { %v1542_v58 = vadd.f32 %v3740_v27, %v1522_v53  ;;  %v1473_v59 = vadd.f32 %v3068_v55, %v3725_v16  ;;  %v1464_v61 = vpop.f32.mrb[41].mxu1 }
 0x5ba   : > { %v1540_v63 = vadd.f32 %v3740_v27, %v1520_v54  ;;  %v1465_v0 = vadd.f32 %v3725_v16, %v1464_v61  ;;  %v3069_v1 = vpop.f32.mrb[42].mxu1 }
 0x5bb   : > { %v1505_v2 = vmax.f32 %v1473_v59, 0.0  ;;  %v1476_v3 = vadd.f32 %v3069_v1, %v3725_v16  ;;  %v1467_v4 = vpop.f32.mrb[43].mxu1  ;;  %v1554_v7 = vpack.c.bf16 %v1542_v58, %v1541_v57 }
 0x5bc   : > { %v1503_v8 = vmax.f32 %v1465_v0, 0.0  ;;  %v1468_v9 = vadd.f32 %v3725_v16, %v1467_v4  ;;  %v1553_v11 = vpack.c.bf16 %v1540_v63, %v1539_v62 }
 0x5bd   : > { %v1525_v12 = vmul.f32 %v3731_v51, %v1505_v2  ;;  %v1506_v13 = vmax.f32 %v1476_v3, 0.0 }
 0x5be   : > { %v1523_v14 = vmul.f32 %v3731_v51, %v1503_v8  ;;  %v1504_v15 = vmax.f32 %v1468_v9, 0.0  ;;  %3094 = vmatprep.mubr.bf16.mxu0 %v1553_v11  ;;  %v3801_v11 = vld [vmem:[%s3460_s20 + $0x8] sm:$0xff]  }
 0x5bf   : > { %v1526_v17 = vmul.f32 %v3731_v51, %v1506_v13  ;;  %3095 = vmatmul.mubr.bf16.gmra.mrb[52].mxu0 %v1554_v7  ;;  %v1545_v48 = vadd.f32 %v3740_v27, %v1525_v12  ;;  %v3805_v12 = vld [vmem:[%s3460_s20 + $0x10] sm:$0xff]   ;;  %v3809_v13 = vld [vmem:[%s3460_s20 + $0x18] sm:$0xff]  }
 0x5c0   : > { %v1524_v46 = vmul.f32 %v3731_v51, %v1504_v15  ;;  %v3072_v47 = vpop.f32.mrb[44].mxu1  ;;  %v1543_v18 = vadd.f32 %v3740_v27, %v1523_v14  ;;  %v3813_v14 = vld [vmem:[%s3460_s20 + $0x20] sm:$0xff]   ;;  %v3817_v15 = vld [vmem:[%s3460_s20 + $0x28] sm:$0xff]  }
 0x5c1   : > { %v1546_v49 = vadd.f32 %v3740_v27, %v1526_v17  ;;  %v1489_v50 = vadd.f32 %v3072_v47, %v3725_v16  ;;  %v1480_v52 = vpop.f32.mrb[45].mxu1  ;;  %v3821_v17 = vld [vmem:[%s3460_s20 + $0x30] sm:$0xff]   ;;  %v3351_v47 = vld [vmem:[%s3460_s20] sm:$0xff]  }
 0x5c2   : > { %v1544_v19 = vadd.f32 %v3740_v27, %v1524_v46  ;;  %v1481_v20 = vadd.f32 %v3725_v16, %v1480_v52  ;;  %v3073_v22 = vpop.f32.mrb[46].mxu1  ;;  %v3825_v46 = vld [vmem:[%s3460_s20 + $0x38] sm:$0xff]   ;;  %v3841_v52 = vld [vmem:[%s3993_s5 + $0x3] ss:$0 sm:$0xff] }
 0x5c3   : > { %v1509_v23 = vmax.f32 %v1489_v50, 0.0  ;;  %v1492_v24 = vadd.f32 %v3073_v22, %v3725_v16  ;;  %v1483_v25 = vpop.f32.mrb[47].mxu1  ;;  %v1556_v26 = vpack.c.bf16 %v1546_v49, %v1545_v48  ;;  %v3325_v48 = vld [vmem:[%s3991_s3 + $0x128] sm:$0xff]   ;;  %v3326_v49 = vld [vmem:[%s3991_s3 + $0x130] sm:$0xff]   ;;  %v3327_v50 = vld [vmem:[%s3991_s3 + $0x138] sm:$0xff]  }
 0x5c4   : > { %v1507_v56 = vmax.f32 %v1481_v20, 0.0  ;;  %v1484_v28 = vadd.f32 %v3725_v16, %v1483_v25  ;;  %v1555_v29 = vpack.c.bf16 %v1544_v19, %v1543_v18  ;;  %v3846_v19 = vld [vmem:[%s3994_s6 + $0x3] ss:$0 sm:$0xff] }
 0x5c5   : > { %v1529_v30 = vmul.f32 %v3731_v51, %v1509_v23  ;;  %v1510_v60 = vmax.f32 %v1492_v24, 0.0 }
 0x5c6   : > { %v1527_v31 = vmul.f32 %v3731_v51, %v1507_v56  ;;  %v1508_v6 = vmax.f32 %v1484_v28, 0.0  ;;  %3098 = vmatprep.mubr.bf16.mxu0 %v1555_v29 }
 0x5c7   : > { %v1530_v32 = vmul.f32 %v3731_v51, %v1510_v60  ;;  %3099 = vmatmul.mubr.bf16.gmra.mrb[56].mxu0 %v1556_v26  ;;  %v1549_v34 = vadd.f32 %v3740_v27, %v1529_v30 }
 0x5c8   : > { %v1528_v33 = vmul.f32 %v3731_v51, %v1508_v6  ;;  %v1547_v36 = vadd.f32 %v3740_v27, %v1527_v31  ;;  %v3321_v51 = vld [vmem:[%s3991_s3 + $0x108] sm:$0xff]  }
 0x5c9   : > { %v1550_v35 = vadd.f32 %v3740_v27, %v1530_v32  ;;  %3140 = vmatprep.subr.bf16.mxu0 %v3321_v51 }
 0x5ca   : > { %v1548_v16 = vadd.f32 %v3740_v27, %v1528_v33  ;;  %3141 = vmatpush3.bf16.msra.mxu0 %v3321_v51  ;;  %v3323_v27 = vld [vmem:[%s3991_s3 + $0x118] sm:$0xff]  }
 0x5cb   : > { %v1558_v37 = vpack.c.bf16 %v1550_v35, %v1549_v34  ;;  %3142 = vmatprep.subr.bf16.mxu0 %v3322_v39 }
 0x5cc   : > { %v1557_v38 = vpack.c.bf16 %v1548_v16, %v1547_v36 }
 0x5ce   : > { %3102 = vmatprep.mubr.bf16.mxu0 %v1557_v38  ;;  %3143 = vmatpush3.bf16.msra.mxu0 %v3322_v39 }
 0x5cf   : > { %3103 = vmatmul.mubr.bf16.gmra.mrb[60].mxu0 %v1558_v37  ;;  %3144 = vmatprep.subr.bf16.mxu0 %v3323_v27 }
 0x5d2   : > { %3145 = vmatpush3.bf16.msra.mxu0 %v3323_v27 }
 0x5d3   : > { %3146 = vmatprep.subr.bf16.mxu0 %v3324_v40 }
 0x5d6   : > { %3147 = vmatpush3.bf16.msra.mxu0 %v3324_v40 }
 0x5d7   : > { %3148 = vmatprep.subr.bf16.mxu0 %v3325_v48 }
 0x5da   : > { %3149 = vmatpush3.bf16.msra.mxu0 %v3325_v48 }
 0x5db   : > { %3150 = vmatprep.subr.bf16.mxu0 %v3326_v49 }
 0x5de   : > { %3151 = vmatpush3.bf16.msra.mxu0 %v3326_v49 }
 0x5df   : > { %3152 = vmatprep.subr.bf16.mxu0 %v3327_v50 }
 0x5e2   : > { %3153 = vmatpush3.bf16.msra.mxu0 %v3327_v50 }
 0x68a   : > { %v3092_v41 = vpop.f32.mrb[48].mxu0 }
 0x68b   : > { %v1658_v10 = vpop.f32.mrb[49].mxu0 }
 0x68c   : > { %v3093_v42 = vpop.f32.mrb[50].mxu0 }
 0x68d   : > { %v1722_v21 = vpack.c.bf16 %v3093_v42, %v3092_v41  ;;  %v1661_v43 = vpop.f32.mrb[51].mxu0 }
 0x68e   : > { %v1721_v44 = vpack.c.bf16 %v1661_v43, %v1658_v10 }
 0x690   : > { %3106 = vmatprep.subr.bf16.mxu1 %v1721_v44 }
 0x691   : > { %3107 = vmatpush3.bf16.msra.mxu1 %v1721_v44 }
 0x692   : > { %v3096_v45 = vpop.f32.mrb[52].mxu0  ;;  %3108 = vmatprep.subr.bf16.mxu1 %v1722_v21 }
 0x693   : > { %v1674_v53 = vpop.f32.mrb[53].mxu0 }
 0x694   : > { %v3097_v54 = vpop.f32.mrb[54].mxu0 }
 0x695   : > { %v1724_v55 = vpack.c.bf16 %v3097_v54, %v3096_v45  ;;  %v1677_v57 = vpop.f32.mrb[55].mxu0  ;;  %3109 = vmatpush3.bf16.msra.mxu1 %v1722_v21 }
 0x696   : > { %v1723_v58 = vpack.c.bf16 %v1677_v57, %v1674_v53 }
 0x698   : > { %3110 = vmatprep.subr.bf16.mxu1 %v1723_v58 }
 0x699   : > { %3111 = vmatpush3.bf16.msra.mxu1 %v1723_v58 }
 0x69a   : > { %v3100_v59 = vpop.f32.mrb[56].mxu0  ;;  %3112 = vmatprep.subr.bf16.mxu1 %v1724_v55 }
 0x69b   : > { %v1690_v61 = vpop.f32.mrb[57].mxu0 }
 0x69c   : > { %v3101_v62 = vpop.f32.mrb[58].mxu0 }
 0x69d   : > { %v1726_v63 = vpack.c.bf16 %v3101_v62, %v3100_v59  ;;  %v1693_v0 = vpop.f32.mrb[59].mxu0  ;;  %3113 = vmatpush3.bf16.msra.mxu1 %v1724_v55 }
 0x69e   : > { %v1725_v1 = vpack.c.bf16 %v1693_v0, %v1690_v61 }
 0x6a0   : > { %3114 = vmatprep.subr.bf16.mxu1 %v1725_v1 }
 0x6a1   : > { %3115 = vmatpush3.bf16.msra.mxu1 %v1725_v1 }
 0x6a2   : > { %v3104_v2 = vpop.f32.mrb[60].mxu0  ;;  %3116 = vmatprep.subr.bf16.mxu1 %v1726_v63 }
 0x6a3   : > { %v1706_v3 = vpop.f32.mrb[61].mxu0 }
 0x6a4   : > { %v3105_v4 = vpop.f32.mrb[62].mxu0 }
 0x6a5   : > { %v1728_v7 = vpack.c.bf16 %v3105_v4, %v3104_v2  ;;  %v1709_v8 = vpop.f32.mrb[63].mxu0  ;;  %3117 = vmatpush3.bf16.msra.mxu1 %v1726_v63 }
 0x6a6   : > { %v1727_v9 = vpack.c.bf16 %v1709_v8, %v1706_v3 }
 0x6a8   : > { %3118 = vmatprep.subr.bf16.mxu1 %v1727_v9 }
 0x6a9   : > { %3119 = vmatpush3.bf16.msra.mxu1 %v1727_v9 }
 0x6aa   : > { %3120 = vmatprep.subr.bf16.mxu1 %v1728_v7 }
 0x6ad   : > { %3121 = vmatpush3.bf16.msra.mxu1 %v1728_v7 }
 0x6b0   : > { %3123 = vmatmul.mubr.bf16.vlgmr.msra.gmra.mrb[48].mxu1 %v3801_v11 }
 0x6b1   : > { %3126 = vmatprep.mubr.bf16.mxu1 %v3805_v12 }
 0x6b8   : > { %3127 = vmatmul.mubr.bf16.gmra.mrb[52].mxu1 %v3809_v13 }
 0x6b9   : > { %3130 = vmatprep.mubr.bf16.mxu1 %v3813_v14 }
 0x6c0   : > { %3131 = vmatmul.mubr.bf16.gmra.mrb[56].mxu1 %v3817_v15 }
 0x6c1   : > { %3134 = vmatprep.mubr.bf16.mxu1 %v3821_v17 }
 0x6c8   : > { %3135 = vmatmul.mubr.bf16.gmra.mrb[60].mxu1 %v3825_v46 }
 0x6c9   : > { %3186 = vmatprep.mubr.bf16.mxu1 %v3351_v47 }
 0x783   : > { %v3124_v18 = vpop.f32.mrb[48].mxu1 }
 0x784   : > { %v1834_v20 = vmul.f32 %v3124_v18, %v3841_v52  ;;  %v1763_v22 = vpop.f32.mrb[49].mxu1 }
 0x785   : > { %v1832_v23 = vmul.f32 %v3841_v52, %v1763_v22  ;;  %v3125_v24 = vpop.f32.mrb[50].mxu1 }
 0x786   : > { %v1854_v25 = vadd.f32 %v3846_v19, %v1834_v20  ;;  %v1835_v26 = vmul.f32 %v3125_v24, %v3841_v52  ;;  %v1766_v56 = vpop.f32.mrb[51].mxu1 }
 0x787   : > { %v1852_v28 = vadd.f32 %v3846_v19, %v1832_v23  ;;  %v1833_v29 = vmul.f32 %v3841_v52, %v1766_v56 }
 0x788   : > { %v1855_v30 = vadd.f32 %v3846_v19, %v1835_v26  ;;  %v1870_v31 = vmax.f32 %v1854_v25, 0.0 }
 0x789   : > { %v1853_v60 = vadd.f32 %v3846_v19, %v1833_v29  ;;  %v1868_v32 = vmax.f32 %v1852_v28, 0.0 }
 0x78a   : > { %v1871_v6 = vmax.f32 %v1855_v30, 0.0 }
 0x78b   : > { %v1869_v33 = vmax.f32 %v1853_v60, 0.0  ;;  %v3128_v34 = vpop.f32.mrb[52].mxu1 }
 0x78c   : > { %v1885_v35 = vpack.c.bf16 %v1871_v6, %v1870_v31  ;;  %v1838_v36 = vmul.f32 %v3128_v34, %v3841_v52  ;;  %v1779_v16 = vpop.f32.mrb[53].mxu1 }
 0x78d   : > { %v1836_v37 = vmul.f32 %v3841_v52, %v1779_v16  ;;  %v3129_v38 = vpop.f32.mrb[54].mxu1  ;;  %v1884_v5 = vpack.c.bf16 %v1869_v33, %v1868_v32 }
 0x78e   : > { %v1858_v51 = vadd.f32 %v3846_v19, %v1838_v36  ;;  %v1839_v39 = vmul.f32 %v3129_v38, %v3841_v52  ;;  %v1782_v27 = vpop.f32.mrb[55].mxu1 }
 0x78f   : > { %v1856_v40 = vadd.f32 %v3846_v19, %v1836_v37  ;;  %v1837_v41 = vmul.f32 %v3841_v52, %v1782_v27  ;;  %3154 = vmatprep.mubr.bf16.mxu0 %v1884_v5 }
 0x790   : > { %v1859_v10 = vadd.f32 %v3846_v19, %v1839_v39  ;;  %3155 = vmatmul.mubr.bf16.vlgmr.msra.gmra.mrb[64].mxu0 %v1885_v35  ;;  %v1874_v21 = vmax.f32 %v1858_v51, 0.0 }
 0x791   : > { %v1857_v42 = vadd.f32 %v3846_v19, %v1837_v41  ;;  %v1872_v44 = vmax.f32 %v1856_v40, 0.0 }
 0x792   : > { %v1875_v43 = vmax.f32 %v1859_v10, 0.0 }
 0x793   : > { %v1873_v45 = vmax.f32 %v1857_v42, 0.0  ;;  %v3132_v53 = vpop.f32.mrb[56].mxu1 }
 0x794   : > { %v1842_v54 = vmul.f32 %v3132_v53, %v3841_v52  ;;  %v1795_v55 = vpop.f32.mrb[57].mxu1  ;;  %v1887_v57 = vpack.c.bf16 %v1875_v43, %v1874_v21 }
 0x795   : > { %v1840_v58 = vmul.f32 %v3841_v52, %v1795_v55  ;;  %v3133_v59 = vpop.f32.mrb[58].mxu1  ;;  %v1886_v61 = vpack.c.bf16 %v1873_v45, %v1872_v44 }
 0x796   : > { %v1862_v62 = vadd.f32 %v3846_v19, %v1842_v54  ;;  %v1843_v63 = vmul.f32 %v3133_v59, %v3841_v52  ;;  %v1798_v0 = vpop.f32.mrb[59].mxu1  ;;  %v3360_v59 = vmov 0.0  }
 0x797   : > { %v1860_v1 = vadd.f32 %v3846_v19, %v1840_v58  ;;  %v1841_v2 = vmul.f32 %v3841_v52, %v1798_v0  ;;  %3158 = vmatprep.mubr.bf16.mxu0 %v1886_v61  ;;  %3202 = vmatprep.subr.bf16.mxu0 %v3360_v59  ;;  %v2673_v61 = vld [vmem:[%s3993_s5 + $0x4] ss:$0 sm:$0xff] }
 0x798   : > { %v1863_v3 = vadd.f32 %v3846_v19, %v1843_v63  ;;  %3159 = vmatmul.mubr.bf16.gmra.mrb[68].mxu0 %v1887_v57  ;;  %v1878_v7 = vmax.f32 %v1862_v62, 0.0 }
 0x799   : > { %v1861_v4 = vadd.f32 %v3846_v19, %v1841_v2  ;;  %v1876_v9 = vmax.f32 %v1860_v1, 0.0  ;;  %v2674_v1 = vld [vmem:[%s3994_s6 + $0x4] ss:$0 sm:$0xff] }
 0x79a   : > { %v1879_v8 = vmax.f32 %v1863_v3, 0.0 }
 0x79b   : > { %v1877_v47 = vmax.f32 %v1861_v4, 0.0  ;;  %v3136_v48 = vpop.f32.mrb[60].mxu1 }
 0x79c   : > { %v1846_v49 = vmul.f32 %v3136_v48, %v3841_v52  ;;  %v1811_v50 = vpop.f32.mrb[61].mxu1  ;;  %v1889_v18 = vpack.c.bf16 %v1879_v8, %v1878_v7 }
 0x79d   : > { %v1844_v20 = vmul.f32 %v3841_v52, %v1811_v50  ;;  %v3137_v22 = vpop.f32.mrb[62].mxu1  ;;  %v1888_v23 = vpack.c.bf16 %v1877_v47, %v1876_v9 }
 0x79e   : > { %v1866_v24 = vadd.f32 %v3846_v19, %v1846_v49  ;;  %v1847_v25 = vmul.f32 %v3137_v22, %v3841_v52  ;;  %v1814_v26 = vpop.f32.mrb[63].mxu1 }
 0x79f   : > { %v1864_v56 = vadd.f32 %v3846_v19, %v1844_v20  ;;  %v1845_v28 = vmul.f32 %v3841_v52, %v1814_v26  ;;  %3162 = vmatprep.mubr.bf16.mxu0 %v1888_v23 }
 0x7a0   : > { %v1867_v29 = vadd.f32 %v3846_v19, %v1847_v25  ;;  %3163 = vmatmul.mubr.bf16.gmra.mrb[72].mxu0 %v1889_v18  ;;  %v1882_v60 = vmax.f32 %v1866_v24, 0.0 }
 0x7a1   : > { %v1865_v30 = vadd.f32 %v3846_v19, %v1845_v28  ;;  %v1880_v6 = vmax.f32 %v1864_v56, 0.0 }
 0x7a2   : > { %v1883_v31 = vmax.f32 %v1867_v29, 0.0 }
 0x7a3   : > { %v1881_v32 = vmax.f32 %v1865_v30, 0.0 }
 0x7a4   : > { %v1891_v33 = vpack.c.bf16 %v1883_v31, %v1882_v60 }
 0x7a5   : > { %v1890_v34 = vpack.c.bf16 %v1881_v32, %v1880_v6 }
 0x7a7   : > { %3166 = vmatprep.mubr.bf16.mxu0 %v1890_v34 }
 0x7a8   : > { %3167 = vmatmul.mubr.bf16.gmra.mrb[76].mxu0 %v1891_v33 }
 0x7a9   : > { %3218 = vmatprep.mubr.msk.bf16.mxu0 %vm3361_vm0, %v3360_v59 }
 0x863   : > { %v3156_v35 = vpop.f32.mrb[64].mxu0 }
 0x864   : > { %v1991_v36 = vpop.f32.mrb[65].mxu0 }
 0x865   : > { %v3157_v16 = vpop.f32.mrb[66].mxu0 }
 0x866   : > { %v2055_v37 = vpack.c.bf16 %v3157_v16, %v3156_v35  ;;  %v1994_v38 = vpop.f32.mrb[67].mxu0 }
 0x867   : > { %v2054_v52 = vpack.c.bf16 %v1994_v38, %v1991_v36 }
 0x869   : > { %3170 = vmatprep.subr.bf16.mxu1 %v2054_v52 }
 0x86a   : > { %3171 = vmatpush3.bf16.msra.mxu1 %v2054_v52 }
 0x86b   : > { %v3160_v5 = vpop.f32.mrb[68].mxu0  ;;  %3172 = vmatprep.subr.bf16.mxu1 %v2055_v37 }
 0x86c   : > { %v2007_v51 = vpop.f32.mrb[69].mxu0 }
 0x86d   : > { %v3161_v19 = vpop.f32.mrb[70].mxu0 }
 0x86e   : > { %v2057_v39 = vpack.c.bf16 %v3161_v19, %v3160_v5  ;;  %v2010_v27 = vpop.f32.mrb[71].mxu0  ;;  %3173 = vmatpush3.bf16.msra.mxu1 %v2055_v37 }
 0x86f   : > { %v2056_v40 = vpack.c.bf16 %v2010_v27, %v2007_v51 }
 0x871   : > { %3174 = vmatprep.subr.bf16.mxu1 %v2056_v40 }
 0x872   : > { %3175 = vmatpush3.bf16.msra.mxu1 %v2056_v40 }
 0x873   : > { %v3164_v41 = vpop.f32.mrb[72].mxu0  ;;  %3176 = vmatprep.subr.bf16.mxu1 %v2057_v39 }
 0x874   : > { %v2023_v10 = vpop.f32.mrb[73].mxu0 }
 0x875   : > { %v3165_v42 = vpop.f32.mrb[74].mxu0 }
 0x876   : > { %v2059_v21 = vpack.c.bf16 %v3165_v42, %v3164_v41  ;;  %v2026_v43 = vpop.f32.mrb[75].mxu0  ;;  %3177 = vmatpush3.bf16.msra.mxu1 %v2057_v39 }
 0x877   : > { %v2058_v44 = vpack.c.bf16 %v2026_v43, %v2023_v10 }
 0x879   : > { %3178 = vmatprep.subr.bf16.mxu1 %v2058_v44 }
 0x87a   : > { %3179 = vmatpush3.bf16.msra.mxu1 %v2058_v44 }
 0x87b   : > { %v3168_v45 = vpop.f32.mrb[76].mxu0  ;;  %3180 = vmatprep.subr.bf16.mxu1 %v2059_v21 }
 0x87c   : > { %v2039_v53 = vpop.f32.mrb[77].mxu0 }
 0x87d   : > { %v3169_v54 = vpop.f32.mrb[78].mxu0 }
 0x87e   : > { %v2061_v55 = vpack.c.bf16 %v3169_v54, %v3168_v45  ;;  %v2042_v57 = vpop.f32.mrb[79].mxu0  ;;  %3181 = vmatpush3.bf16.msra.mxu1 %v2059_v21 }
 0x87f   : > { %v2060_v58 = vpack.c.bf16 %v2042_v57, %v2039_v53 }
 0x881   : > { %3182 = vmatprep.subr.bf16.mxu1 %v2060_v58 }
 0x882   : > { %3183 = vmatpush3.bf16.msra.mxu1 %v2060_v58 }
 0x883   : > { %3184 = vmatprep.subr.bf16.mxu1 %v2061_v55 }
 0x886   : > { %3185 = vmatpush3.bf16.msra.mxu1 %v2061_v55 }
 0x887   : > { %3222 = vmatprep.subr.bf16.mxu1 %v3360_v59 }
 0x889   : > { %3187 = vmatmul.mubr.bf16.vlgmr.msra.gmra.mrb[64].mxu1 %v3801_v11  ;;  %v3328_v11 = vld [vmem:[%s3995_s7] sm:$0xff]  }
 0x88a   : > { %3190 = vmatprep.mubr.bf16.mxu1 %v3805_v12  ;;  %3223 = vmatpush3.bf16.msra.mxu1 %v3328_v11  ;;  %v3329_v12 = vld [vmem:[%s3995_s7 + $0x8] sm:$0xff]  }
 0x88b   : > { %3224 = vmatprep.subr.bf16.mxu1 %v3360_v59 }
 0x88e   : > { %3225 = vmatpush3.bf16.msra.mxu1 %v3329_v12 }
 0x88f   : > { %3226 = vmatprep.subr.bf16.mxu1 %v3360_v59 }
 0x891   : > { %3191 = vmatmul.mubr.bf16.gmra.mrb[68].mxu1 %v3809_v13  ;;  %v3330_v13 = vld [vmem:[%s3995_s7 + $0x10] sm:$0xff]  }
 0x892   : > { %3194 = vmatprep.mubr.bf16.mxu1 %v3813_v14  ;;  %3227 = vmatpush3.bf16.msra.mxu1 %v3330_v13  ;;  %v3331_v14 = vld [vmem:[%s3995_s7 + $0x18] sm:$0xff]   ;;  %v2209_v13 = vld [vmem:[%s413_s14] sm:$0x1] }
 0x893   : > { %3228 = vmatprep.subr.bf16.mxu1 %v3360_v59 }
 0x896   : > { %3229 = vmatpush3.bf16.msra.mxu1 %v3331_v14  ;;  %v3335_v14 = vld [vmem:[%s3995_s7 + $0x38] sm:$0xff]  }
 0x897   : > { %3230 = vmatprep.subr.bf16.mxu1 %v3360_v59 }
 0x899   : > { %3195 = vmatmul.mubr.bf16.gmra.mrb[72].mxu1 %v3817_v15  ;;  %v3332_v15 = vld [vmem:[%s3995_s7 + $0x20] sm:$0xff]  }
 0x89a   : > { %3198 = vmatprep.mubr.bf16.mxu1 %v3821_v17  ;;  %3231 = vmatpush3.bf16.msra.mxu1 %v3332_v15  ;;  %v3333_v17 = vld [vmem:[%s3995_s7 + $0x28] sm:$0xff]   ;;  %v3336_v15 = vld [vmem:[%s3997_s9] sm:$0xff]  }
 0x89b   : > { %3232 = vmatprep.subr.bf16.mxu1 %v3360_v59 }
 0x89e   : > { %3233 = vmatpush3.bf16.msra.mxu1 %v3333_v17  ;;  %v3337_v17 = vld [vmem:[%s3997_s9 + $0x8] sm:$0xff]  }
 0x89f   : > { %3234 = vmatprep.subr.bf16.mxu1 %v3360_v59 }
 0x8a1   : > { %3199 = vmatmul.mubr.bf16.gmra.mrb[76].mxu1 %v3825_v46  ;;  %v3334_v46 = vld [vmem:[%s3995_s7 + $0x30] sm:$0xff]  }
 0x8a2   : > { %3238 = vmatprep.mubr.msk.bf16.mxu1 %vm3361_vm0, %v3360_v59  ;;  %3235 = vmatpush3.bf16.msra.mxu1 %v3334_v46  ;;  %v3338_v46 = vld [vmem:[%s3997_s9 + $0x10] sm:$0xff]  }
 0x8a3   : > { %3236 = vmatprep.subr.bf16.mxu1 %v3360_v59 }
 0x8a6   : > { %3237 = vmatpush3.bf16.msra.mxu1 %v3335_v14 }
 0x95c   : > { %v3188_v62 = vpop.f32.mrb[64].mxu1 }
 0x95d   : > { %v2167_v63 = vmul.f32 %v3188_v62, %v2673_v61  ;;  %v2096_v0 = vpop.f32.mrb[65].mxu1  ;;  %v3340_v62 = vld [vmem:[%s3997_s9 + $0x20] sm:$0xff]  }
 0x95e   : > { %v2165_v2 = vmul.f32 %v2673_v61, %v2096_v0  ;;  %v3189_v3 = vpop.f32.mrb[66].mxu1 }
 0x95f   : > { %v2168_v4 = vmul.f32 %v3189_v3, %v2673_v61  ;;  %v2099_v7 = vpop.f32.mrb[67].mxu1  ;;  %v2187_v9 = vadd.f32 %v2674_v1, %v2167_v63  ;;  %v3341_v63 = vld [vmem:[%s3997_s9 + $0x28] sm:$0xff]  }
 0x960   : > { %v2166_v8 = vmul.f32 %v2673_v61, %v2099_v7  ;;  %v2185_v48 = vadd.f32 %v2674_v1, %v2165_v2 }
 0x961   : > { %v2188_v47 = vadd.f32 %v2674_v1, %v2168_v4 }
 0x962   : > { %v2186_v49 = vadd.f32 %v2674_v1, %v2166_v8  ;;  %v3342_v8 = vld [vmem:[%s3997_s9 + $0x30] sm:$0xff]  }
 0x963   : > { %v2202_v50 = vpack.c.bf16 %v2188_v47, %v2187_v9  ;;  %v3343_v9 = vld [vmem:[%s3997_s9 + $0x38] sm:$0xff]   ;;  %v2268_v47 = vld [vmem:[%s3996_s8] sm:$0x1] }
 0x964   : > { %v2201_v18 = vpack.c.bf16 %v2186_v49, %v2185_v48  ;;  %v3192_v20 = vpop.f32.mrb[68].mxu1 }
 0x965   : > { %v2171_v22 = vmul.f32 %v3192_v20, %v2673_v61  ;;  %v2112_v23 = vpop.f32.mrb[69].mxu1 }
 0x966   : > { %v2169_v24 = vmul.f32 %v2673_v61, %v2112_v23  ;;  %v3193_v25 = vpop.f32.mrb[70].mxu1  ;;  %3203 = vmatpush3.bf16.msra.mxu0 %v2201_v18 }
 0x967   : > { %v2172_v26 = vmul.f32 %v3193_v25, %v2673_v61  ;;  %v2115_v56 = vpop.f32.mrb[71].mxu1  ;;  %3204 = vmatprep.subr.bf16.mxu0 %v3360_v59  ;;  %v2191_v29 = vadd.f32 %v2674_v1, %v2171_v22 }
 0x968   : > { %v2170_v28 = vmul.f32 %v2673_v61, %v2115_v56  ;;  %v2189_v60 = vadd.f32 %v2674_v1, %v2169_v24 }
 0x969   : > { %v2192_v30 = vadd.f32 %v2674_v1, %v2172_v26 }
 0x96a   : > { %v2190_v31 = vadd.f32 %v2674_v1, %v2170_v28  ;;  %3205 = vmatpush3.bf16.msra.mxu0 %v2202_v50 }
 0x96b   : > { %v2204_v6 = vpack.c.bf16 %v2192_v30, %v2191_v29  ;;  %3206 = vmatprep.subr.bf16.mxu0 %v3360_v59 }
 0x96c   : > { %v2203_v32 = vpack.c.bf16 %v2190_v31, %v2189_v60  ;;  %v3196_v33 = vpop.f32.mrb[72].mxu1 }
 0x96d   : > { %v2175_v34 = vmul.f32 %v3196_v33, %v2673_v61  ;;  %v2128_v35 = vpop.f32.mrb[73].mxu1 }
 0x96e   : > { %v2173_v36 = vmul.f32 %v2673_v61, %v2128_v35  ;;  %v3197_v16 = vpop.f32.mrb[74].mxu1  ;;  %3207 = vmatpush3.bf16.msra.mxu0 %v2203_v32 }
 0x96f   : > { %v2176_v37 = vmul.f32 %v3197_v16, %v2673_v61  ;;  %v2131_v38 = vpop.f32.mrb[75].mxu1  ;;  %3208 = vmatprep.subr.bf16.mxu0 %v3360_v59  ;;  %v2195_v5 = vadd.f32 %v2674_v1, %v2175_v34 }
 0x970   : > { %v2174_v52 = vmul.f32 %v2673_v61, %v2131_v38  ;;  %v2193_v19 = vadd.f32 %v2674_v1, %v2173_v36 }
 0x971   : > { %v2196_v51 = vadd.f32 %v2674_v1, %v2176_v37 }
 0x972   : > { %v2194_v39 = vadd.f32 %v2674_v1, %v2174_v52  ;;  %3209 = vmatpush3.bf16.msra.mxu0 %v2204_v6 }
 0x973   : > { %v2206_v27 = vpack.c.bf16 %v2196_v51, %v2195_v5  ;;  %3210 = vmatprep.subr.bf16.mxu0 %v3360_v59 }
 0x974   : > { %v2205_v40 = vpack.c.bf16 %v2194_v39, %v2193_v19  ;;  %v3200_v41 = vpop.f32.mrb[76].mxu1 }
 0x975   : > { %v2179_v10 = vmul.f32 %v3200_v41, %v2673_v61  ;;  %v2144_v42 = vpop.f32.mrb[77].mxu1 }
 0x976   : > { %v2177_v21 = vmul.f32 %v2673_v61, %v2144_v42  ;;  %v3201_v43 = vpop.f32.mrb[78].mxu1  ;;  %3211 = vmatpush3.bf16.msra.mxu0 %v2205_v40 }
 0x977   : > { %v2180_v44 = vmul.f32 %v3201_v43, %v2673_v61  ;;  %v2147_v45 = vpop.f32.mrb[79].mxu1  ;;  %3212 = vmatprep.subr.bf16.mxu0 %v3360_v59  ;;  %v2199_v54 = vadd.f32 %v2674_v1, %v2179_v10 }
 0x978   : > { %v2178_v53 = vmul.f32 %v2673_v61, %v2147_v45  ;;  %v2197_v57 = vadd.f32 %v2674_v1, %v2177_v21  ;;  %v3339_v61 = vld [vmem:[%s3997_s9 + $0x18] sm:$0xff]  }
 0x979   : > { %v2200_v55 = vadd.f32 %v2674_v1, %v2180_v44 }
 0x97a   : > { %v2198_v58 = vadd.f32 %v2674_v1, %v2178_v53  ;;  %3213 = vmatpush3.bf16.msra.mxu0 %v2206_v27 }
 0x97b   : > { %v2208_v11 = vpack.c.bf16 %v2200_v55, %v2199_v54  ;;  %3214 = vmatprep.subr.bf16.mxu0 %v3360_v59 }
 0x97c   : > { %v2207_v12 = vpack.c.bf16 %v2198_v58, %v2197_v57 }
 0x97e   : > { %3215 = vmatpush3.bf16.msra.mxu0 %v2207_v12 }
 0x97f   : > { %3216 = vmatprep.subr.bf16.mxu0 %v3360_v59 }
 0x982   : > { %3217 = vmatpush3.bf16.msra.mxu0 %v2208_v11 }
 0x983   : > { %3242 = vmatprep.subr.bf16.mxu0 %v3360_v59 }
 0x985   : > { %3219 = vmatmul.mubr.bf16.vlgmr.msra.gmra.mrb[80].mxu0 %v2209_v13 }
 0x986   : > { %3258 = vmatprep.mubr.msk.bf16.mxu0 %vm3361_vm0, %v3360_v59  ;;  %3243 = vmatpush3.bf16.msra.mxu0 %v3336_v15 }
 0x987   : > { %3244 = vmatprep.subr.bf16.mxu0 %v3360_v59 }
 0x98a   : > { %3245 = vmatpush3.bf16.msra.mxu0 %v3337_v17 }
 0x98b   : > { %3246 = vmatprep.subr.bf16.mxu0 %v3360_v59 }
 0x98e   : > { %3247 = vmatpush3.bf16.msra.mxu0 %v3338_v46 }
 0x98f   : > { %3248 = vmatprep.subr.bf16.mxu0 %v3360_v59 }
 0x992   : > { %3249 = vmatpush3.bf16.msra.mxu0 %v3339_v61 }
 0x993   : > { %3250 = vmatprep.subr.bf16.mxu0 %v3360_v59 }
 0x996   : > { %3251 = vmatpush3.bf16.msra.mxu0 %v3340_v62 }
 0x997   : > { %3252 = vmatprep.subr.bf16.mxu0 %v3360_v59 }
 0x99a   : > { %3253 = vmatpush3.bf16.msra.mxu0 %v3341_v63 }
 0x99b   : > { %3254 = vmatprep.subr.bf16.mxu0 %v3360_v59 }
 0x99e   : > { %3255 = vmatpush3.bf16.msra.mxu0 %v3342_v8 }
 0x99f   : > { %3256 = vmatprep.subr.bf16.mxu0 %v3360_v59  ;;  %v2375_v59 = vld [vmem:[%s3998_s10] sm:$0x1] }
 0x9a2   : > { %3257 = vmatpush3.bf16.msra.mxu0 %v3343_v9 }
 0xa58   : > { %v2244_v0 = vpop.f32.mrb[80].mxu0 }
 0xa59   : > { %v2250_v1 = vmax.f32 %v2244_v0, 0.0  ;;  %v3220_v2 = vpop.f32.mrb[81].mxu0 }
 0xa5a   : > { %v2247_v3 = vpop.f32.mrb[82].mxu0 }
 0xa5b   : > { %v2251_v4 = vpack.c.bf16 %v2250_v1, %v2250_v1  ;;  %v3221_v7 = vpop.f32.mrb[83].mxu0 }
 0xa5d   : > { %3239 = vmatmul.mubr.bf16.vlgmr.msra.gmra.mrb[80].mxu1 %v2251_v4 }
 0xb30   : > { %v2351_v48 = vpop.f32.mrb[80].mxu1 }
 0xb31   : > { %v2352_v49 = vadd.f32 %v2351_v48, %v2268_v47  ;;  %v3240_v50 = vpop.f32.mrb[81].mxu1 }
 0xb32   : > { %v2354_v18 = vpop.f32.mrb[82].mxu1 }
 0xb33   : > { %v2357_v20 = vmax.f32 %v2352_v49, 0.0  ;;  %v3241_v22 = vpop.f32.mrb[83].mxu1 }
 0xb35   : > { %v2358_v23 = vpack.c.bf16 %v2357_v20, %v2357_v20 }
 0xb37   : > { %3259 = vmatmul.mubr.bf16.vlgmr.msra.gmra.mrb[84].mxu0 %v2358_v23 }
 0xc0a   : > { %v2458_v24 = vpop.f32.mrb[84].mxu0 }
 0xc0b   : > { %v2459_v25 = vadd.f32 %v2458_v24, %v2375_v59  ;;  %v3260_v26 = vpop.f32.mrb[85].mxu0 }
 0xc0c   : > { %v2461_v56 = vpop.f32.mrb[86].mxu0 }
 0xc0d   : > { %2464 = vst [vmem:[%s416_s25] sm:$0x1] %v2459_v25  ;;  %v3261_v28 = vpop.f32.mrb[87].mxu0 }
 0xc0e PF: > { %s21_s17 = sadd.s32 1, %s3358_s17  }
 0xc0f   : > { %p18_p4 = scmp.ge.s32.totalorder %s21_s17, 6  }
 0xc11   :  { %20 = sbr.rel (!%p18_p4) target bundleno = 1 (0x1), region = 104 }

</bundles_post_ra>
